<compile_context>
chip_gen: v6e
topology: v6e:2x2x1
jax: 0.10.0
libtpu: 0.0.40
codegen_flags: <defaults>
</compile_context>

<pallas_src>
import functools

import numpy as np

import jax
import jax.numpy as jnp
from jax import lax
from jax.experimental import pallas as pl
from jax.experimental.pallas import tpu as pltpu


def _pair(v):
    if isinstance(v, (tuple, list)):
        return int(v[0]), int(v[1])
    return int(v), int(v)


def _sublane(itemsize):
    # Packed-sublane multiple per dtype width (f32: 8, bf16: 16, int8/fp8: 32).
    return {4: 8, 2: 16, 1: 32}.get(int(itemsize), 8)


def _build_selection(g, kh, kw, wc, wo, pool_type, dtype):
    """Host-side (g*kh*wc, g*wo) block-diagonal selection matrix, built once.

    max: picks lane grp*kh*wc + o*kw of the roll-reduced accumulator.
    avg: sums the whole kh x kw window with 1/(kh*kw) baked into the entries.
    """
    win = kh * wc
    sel = np.zeros((g * win, g * wo), dtype=np.float32)
    for grp in range(g):
        for o in range(wo):
            if pool_type == "max":
                sel[grp * win + o * kw, grp * wo + o] = 1.0
            else:
                for j in range(kh):
                    for l in range(kw):
                        sel[grp * win + j * wc + o * kw + l, grp * wo + o] = 1.0 / (kh * kw)
    return jnp.asarray(sel, dtype=dtype)


def _pool_kernel(sel_ref, x_ref, o_ref, *, kh, kw, wc, pool_type, precision):
    """Pools one (rows, g*kh*wc) tile of non-overlapping kh x kw windows."""
    x = x_ref[...]
    cdt = sel_ref.dtype
    xc = x if x.dtype == cdt else x.astype(cdt)
    width = xc.shape[-1]

    if pool_type == "max":
        # Separable reduce: (kw-1) lane rolls for W, then (kh-1) rolls of the
        # W-reduced accumulator for H.  Rolls run on the XLU; only the lanes
        # later picked by the selection matmul are meaningful, and no circular
        # wraparound ever reaches a selected lane.
        acc = xc
        for l in range(1, kw):
            acc = jnp.maximum(acc, pltpu.roll(xc, shift=width - l, axis=1))
        accw = acc
        for j in range(1, kh):
            acc = jnp.maximum(acc, pltpu.roll(accw, shift=width - j * wc, axis=1))
    else:
        # avg: the single selection matmul does the whole window sum + scale.
        acc = xc

    out = jnp.dot(acc, sel_ref[...], preferred_element_type=jnp.float32,
                  precision=precision)
    o_ref[...] = out.astype(o_ref.dtype)


def pool_layer_forward(x, pool_stride=2, pool_kernel=2, pool_type="max",
                       tensor_dim=2):
    """PoolLayer.forward.

    Mirrors nn.MaxPool2d/AvgPool2d(pool_stride, pool_kernel) (and the 1-D
    variants): because of the module's argument order, kernel_size =
    pool_stride and stride = pool_kernel.  No padding, floor mode.
    """
    if pool_type not in ("max", "avg"):
        raise ValueError(f"unsupported pool_type: {pool_type}")

    if tensor_dim == 1:
        n, c, length = x.shape
        kh, kw = 1, int(pool_stride)
        sh, sw = 1, int(pool_kernel)
        x4 = x.reshape(n, c, 1, length)
    elif tensor_dim == 2:
        kh, kw = _pair(pool_stride)
        sh, sw = _pair(pool_kernel)
        x4 = x
    else:
        raise ValueError(f"Only 1d and 2d tensors are supported. Got: {tensor_dim}")

    if (kh, kw) != (sh, sw):
        # TODO(synk): overlapping windows (kernel_size != stride) unsupported.
        raise NotImplementedError("only kernel_size == stride (module default) is supported")

    n, c, h, w = x4.shape
    ho = (h - kh) // sh + 1
    wo = (w - kw) // sw + 1
    hc, wc = ho * kh, wo * kw
    if (hc, wc) != (h, w):
        # Floor-mode remainder crop (PyTorch default); a no-op when divisible.
        # TODO(synk): mask the remainder in-kernel to avoid this extra HBM pass.
        x4 = x4[:, :, :hc, :wc]

    rows_out = n * c * ho

    # Lane-density grouping: pack g consecutive output rows onto the lane axis
    # so the output slab is >= 128 lanes wide whenever possible (unmasked vst).
    g = 1
    if wo < 128:
        for cand in range(min(max(1, 128 // wo), rows_out), 0, -1):
            if rows_out % cand == 0:
                g = cand
                break
    rows = rows_out // g
    width_in = g * kh * wc
    width_out = g * wo

    itemsize = jnp.dtype(x.dtype).itemsize
    sub = _sublane(itemsize)

    # Compute dtype / precision: a bf16 0/1 gather is exact at default
    # precision (single native MXU pass); only true f32 needs HIGHEST.
    if x.dtype == jnp.bfloat16:
        comp_dtype, precision = jnp.bfloat16, None
    else:
        comp_dtype, precision = jnp.float32, lax.Precision.HIGHEST

    sel = _build_selection(g, kh, kw, wc, wo, pool_type, comp_dtype)

    # Per-generation tile size / scoped-VMEM budget (fallback is v7x-safe).
    try:
        vmem_cap = int(pltpu.get_tpu_info().vmem_capacity_bytes)
    except Exception:
        vmem_cap = 64 * 1024 * 1024
    vmem_limit = min((vmem_cap * 3) // 4, 96 * 1024 * 1024)
    target_bytes = 8 * 1024 * 1024 if vmem_cap > 64 * 1024 * 1024 else 6 * 1024 * 1024

    r_blk = max(sub, target_bytes // max(1, width_in * itemsize))
    if rows > sub:
        # Keep at least 2 grid steps so both v7x TensorCores get work.
        half = -(-rows // 2)
        half = -(-half // sub) * sub
        r_blk = min(r_blk, half)
    r_blk = max(sub, (r_blk // sub) * sub)
    if r_blk >= rows:
        r_blk = rows  # full extent (legal even when not a sublane multiple)
    grid = (pl.cdiv(rows, r_blk),)

    x2 = x4.reshape(rows, width_in)  # free view: rows of g whole kh x wc windows
    kernel = functools.partial(_pool_kernel, kh=kh, kw=kw, wc=wc,
                               pool_type=pool_type, precision=precision)

    out2 = pl.pallas_call(
        kernel,
        out_shape=jax.ShapeDtypeStruct((rows, width_out), x.dtype),
        grid=grid,
        in_specs=[
            pl.BlockSpec((width_in, width_out), lambda r: (0, 0)),  # resident sel
            pl.BlockSpec((r_blk, width_in), lambda r: (r, 0)),
        ],
        out_specs=pl.BlockSpec((r_blk, width_out), lambda r: (r, 0)),
        compiler_params=pltpu.CompilerParams(
            dimension_semantics=("parallel",),
            vmem_limit_bytes=vmem_limit),
    )(sel, x2)

    out = out2.reshape(n, c, ho, wo)  # free view back to NCHW
    if tensor_dim == 1:
        out = out.reshape(n, c, wo)
    return out


if __name__ == "__main__":
    key = jax.random.PRNGKey(0)
    # [batch, channels, frames, features] per the module's docstring.
    x = jax.random.normal(key, (2, 4, 16, 16), dtype=jnp.float32)

    fwd = jax.jit(pool_layer_forward,
                  static_argnames=("pool_stride", "pool_kernel", "pool_type",
                                   "tensor_dim"))

    # Default config: 2x2 max pool, stride 2.
    out = jax.block_until_ready(fwd(x))
    ref = x.reshape(2, 4, 8, 2, 8, 2).max(axis=(3, 5))
    assert out.shape == (2, 4, 8, 8), out.shape
    assert out.dtype == x.dtype
    assert jnp.allclose(out, ref, rtol=1e-4, atol=1e-4), "max-pool mismatch"

    # avg-pool branch (Operations.avg_pool).
    out_avg = jax.block_until_ready(fwd(x, pool_type="avg"))
    ref_avg = x.reshape(2, 4, 8, 2, 8, 2).mean(axis=(3, 5))
    assert jnp.allclose(out_avg, ref_avg, rtol=1e-4, atol=1e-4), "avg-pool mismatch"

    # tensor_dim=1 branch (MaxPool1d(pool_stride, pool_kernel)).
    x1 = jax.random.normal(jax.random.PRNGKey(0), (2, 4, 16), dtype=jnp.float32)
    out1 = jax.block_until_ready(fwd(x1, tensor_dim=1))
    ref1 = x1.reshape(2, 4, 8, 2).max(axis=-1)
    assert out1.shape == (2, 4, 8), out1.shape
    assert jnp.allclose(out1, ref1, rtol=1e-4, atol=1e-4), "1d max-pool mismatch"

    print("KERNEL_OK")
</pallas_src>

<mosaic_0001>
module attributes {stable_mosaic.version = 11 : i64} {
  func.func @_pool_kernel(%arg0: i32, %arg1: memref<512x128xf32, #tpu.memory_space<vmem>>, %arg2: memref<4x512xf32, #tpu.memory_space<vmem>>, %arg3: memref<4x128xf32, #tpu.memory_space<vmem>>) attributes {dimension_semantics = [#tpu.dimension_semantics<parallel>], iteration_bounds = array<i64: 1>, scalar_prefetch = 0 : i64, scratch_operands = 0 : i64, tpu.core_type = #tpu.core_type<tc>, window_params = [{pipeline_mode = #tpu.pipeline_mode<synchronous>, transform_indices = @transform_0, window_bounds = array<i64: 512, 128>}, {transform_indices = @transform_1, window_bounds = array<i64: 4, 512>}, {transform_indices = @transform_2, window_bounds = array<i64: 4, 128>}]} {
    %c0 = arith.constant 0 : index
    %c0_0 = arith.constant 0 : index
    %0 = vector.load %arg2[%c0, %c0_0] : memref<4x512xf32, #tpu.memory_space<vmem>>, vector<4x512xf32>
    %c511_i32 = arith.constant 511 : i32
    %1 = tpu.dynamic_rotate %0 by %c511_i32 dim 1 : vector<4x512xf32>, i32 -> vector<4x512xf32>
    %2 = arith.maximumf %0, %1 : vector<4x512xf32>
    %c496_i32 = arith.constant 496 : i32
    %3 = tpu.dynamic_rotate %2 by %c496_i32 dim 1 : vector<4x512xf32>, i32 -> vector<4x512xf32>
    %4 = arith.maximumf %2, %3 : vector<4x512xf32>
    %c0_1 = arith.constant 0 : index
    %c0_2 = arith.constant 0 : index
    %5 = vector.load %arg1[%c0_1, %c0_2] : memref<512x128xf32, #tpu.memory_space<vmem>>, vector<512x128xf32>
    %cst = arith.constant dense<0.000000e+00> : vector<4x128xf32>
    %6 = tpu.matmul %4, %5, %cst {dimension_numbers = #tpu.dot_dimension_numbers<[1], [0], [0], [1], [0, 0, 1, 1], [], []>, precision = #tpu.contract_precision<fp32>} : vector<4x512xf32>, vector<512x128xf32>, vector<4x128xf32> -> vector<4x128xf32>
    %c0_3 = arith.constant 0 : index
    %c0_4 = arith.constant 0 : index
    %7 = vector.load %arg3[%c0_3, %c0_4] : memref<4x128xf32, #tpu.memory_space<vmem>>, vector<4x128xf32>
    tpu.vector_store %arg3[%c0_3, %c0_4], %6 {strides = array<i32>} : memref<4x128xf32, #tpu.memory_space<vmem>>, vector<4x128xf32>,
    return
  }
  func.func @transform_0(%arg0: i32) -> (i32, i32) {
    %c0_i32 = arith.constant 0 : i32
    %c0_i32_0 = arith.constant 0 : i32
    %c0_i32_1 = arith.constant 0 : i32
    return %c0_i32, %c0_i32_0 : i32, i32
  }
  func.func @transform_1(%arg0: i32) -> (i32, i32) {
    %c0_i32 = arith.constant 0 : i32
    %c0_i32_0 = arith.constant 0 : i32
    return %arg0, %c0_i32 : i32, i32
  }
  func.func @transform_2(%arg0: i32) -> (i32, i32) {
    %c0_i32 = arith.constant 0 : i32
    %c0_i32_0 = arith.constant 0 : i32
    return %arg0, %c0_i32 : i32, i32
  }
}

</mosaic_0001>

<bundles_post_ra>
// kernel: pool_layer_forward.1
= control target key start
LH: loop header
LB: loop body
LE: loop exit
PB: predicated region body
PF: predicated region fallthrough
CT: control target
= control target key end

     0   :  { %7 = vsyncpa [#allocation3], 0  ;;  %s2336_s9 = smov [#allocation2]   ;;  %s3474_s0 = inlined_call_operand.hbm [shape: f32[512,128], index: 0, kind: input, shape index: {}]   ;;  %s3475_s1 = inlined_call_operand.vmem [shape: f32[4,512], index: 1, kind: input, shape index: {}]   ;;  %s3476_s2 = inlined_call_operand.vmem [shape: f32[4,128], index: 2, kind: output, shape index: {}]  }
   0x1   :  { %s13_s10 = sshll.u32 %s2336_s9, 4  ;;  %s14_s10 = int_to_ptr.vmem [resolvable:$true] %s13_s10 }
   0x2   :  { %s2322_s11 = scalar_lea.vmem %s14_s10, 8192  ;;  %p2327_p1 = scmp.lt.s32.totalorder %s14_s10, %s14_s10 }
   0x3   :  { %p2323_p0 = scmp.ne.s32.totalorder %s14_s10, %s2322_s11  ;;  %p2328_p2 = scmp.lt.s32.totalorder %s2322_s11, %s2322_s11 }
   0x5   :  { %p2329_p3 = por %p2328_p2, %p2327_p1 }
   0x7   :  { %p2330_p4 = pnand %p2329_p3, %p2323_p0 }
   0x9   :  { %2333 = shalt.err (!%p2330_p4)
}
   0xa   :  { %s2337_s12 = smov 128   ;;  %s2338_s13 = smov 8  }
   0xb   :  { %19 = dma.hbm_to_vmem [thread:$0]  %s3474_s0, 8192, %s14_s10, [#allocation3], %s2337_s12, %s2337_s12, %s2338_s13  }
   0xc   :  { %2334 = dma.done.wait [#allocation3], 8192  }
   0xd   :  { %2335 = vsyncadd [#allocation3], 4294959104  ;;  %v2362_v0 = vld [vmem:[%s3475_s1 + $0x8] sm:$0xff]  ;;  %v2367_v1 = vld [vmem:[%s3475_s1] sm:$0xff]  ;;  %s2339_s20 = smov 127   ;;  %s2340_s0 = smov 112  }
   0xe   :  { %37 = vrot.lane.b32.xlu1 %v2362_v0, %s2339_s20  ;;  %33 = vrot.lane.b32.xlu0 %v2367_v1, %s2339_s20  ;;  %v30_v2 = vcombine.high %v2362_v0, %v2362_v0  ;;  %v29_v3 = vcombine.high %v2367_v1, %v2367_v1  ;;  %v118_v4 = vld [vmem:[#allocation2 + $0xf8] sm:$0xff]  ;;  %v117_v6 = vld [vmem:[#allocation2 + $0xf0] sm:$0xff]  ;;  %v116_v11 = vld [vmem:[#allocation2 + $0xe8] sm:$0xff] }
   0xf   :  { %v102_v5 = vld [vmem:[#allocation2 + $0x78] sm:$0xff]  ;;  %v2375_v7 = vand.u32 4294901760, %v118_v4  ;;  %v2379_v9 = vand.u32 4294901760, %v117_v6  ;;  %v101_v10 = vld [vmem:[#allocation2 + $0x70] sm:$0xff]  ;;  %v100_v12 = vld [vmem:[#allocation2 + $0x68] sm:$0xff]  ;;  %v2383_v14 = vand.u32 4294901760, %v116_v11 }
  0x10   :  { %v2377_v8 = vand.u32 4294901760, %v102_v5  ;;  %v2381_v13 = vand.u32 4294901760, %v101_v10  ;;  %v2385_v15 = vand.u32 4294901760, %v100_v12  ;;  %v115_v16 = vld [vmem:[#allocation2 + $0xe0] sm:$0xff]  ;;  %v114_v42 = vld [vmem:[#allocation2 + $0xd8] sm:$0xff]  ;;  %v113_v44 = vld [vmem:[#allocation2 + $0xd0] sm:$0xff] }
  0x11   :  { %v99_v17 = vld [vmem:[#allocation2 + $0x60] sm:$0xff]  ;;  %v2388_v18 = vsub.f32 %v118_v4, %v2375_v7  ;;  %v2394_v20 = vsub.f32 %v117_v6, %v2379_v9  ;;  %v2396_v21 = vand.u32 4294901760, %v115_v16  ;;  %1887 = vmatprep.subr.mxu0 %v2375_v7  ;;  %v2403_v23 = vsub.f32 %v116_v11, %v2383_v14  ;;  %v98_v43 = vld [vmem:[#allocation2 + $0x58] sm:$0xff]  ;;  %v97_v49 = vld [vmem:[#allocation2 + $0x50] sm:$0xff] }
  0x12   :  { %39 = vrot.lane.b32.xlu1 %v30_v2, %s2339_s20  ;;  %35 = vrot.lane.b32.xlu0 %v29_v3, %s2339_s20  ;;  %v2391_v19 = vsub.f32 %v102_v5, %v2377_v8  ;;  %v2400_v22 = vsub.f32 %v101_v10, %v2381_v13  ;;  %v2406_v24 = vsub.f32 %v100_v12, %v2385_v15  ;;  %v2408_v25 = vand.u32 4294901760, %v99_v17  ;;  %v112_v50 = vld [vmem:[#allocation2 + $0xc8] sm:$0xff]  ;;  %v111_v56 = vld [vmem:[#allocation2 + $0xc0] sm:$0xff] }
  0x13   :  { %1888 = vmatpush3.msra.mxu0 %v2377_v8  ;;  %v3495_v26 = vand.u32 4294901760, %v2388_v18  ;;  %v3493_v28 = vand.u32 4294901760, %v2394_v20  ;;  %v2415_v29 = vsub.f32 %v115_v16, %v2396_v21  ;;  %v3491_v31 = vand.u32 4294901760, %v2403_v23  ;;  %v96_v51 = vld [vmem:[#allocation2 + $0x48] sm:$0xff]  ;;  %v95_v61 = vld [vmem:[#allocation2 + $0x40] sm:$0xff] }
  0x14   :  { %v3494_v27 = vand.u32 4294901760, %v2391_v19  ;;  %1889 = vmatprep.subr.mxu0 %v2379_v9  ;;  %v3492_v30 = vand.u32 4294901760, %v2400_v22  ;;  %v3490_v32 = vand.u32 4294901760, %v2406_v24  ;;  %v2422_v33 = vsub.f32 %v99_v17, %v2408_v25 }
  0x15   :  { %1890 = vmatpush3.msra.mxu0 %v2381_v13  ;;  %v385_v34 = vsub.f32 %v2388_v18, %v3495_v26  ;;  %v392_v36 = vsub.f32 %v2394_v20, %v3493_v28  ;;  %v3489_v37 = vand.u32 4294901760, %v2415_v29  ;;  %v399_v39 = vsub.f32 %v2403_v23, %v3491_v31  ;;  %v105_v28 = vld [vmem:[#allocation2 + $0x90] sm:$0xff] }
  0x16   :  { %v273_v35 = vsub.f32 %v2391_v19, %v3494_v27  ;;  %1891 = vmatprep.subr.mxu0 %v2383_v14  ;;  %v280_v38 = vsub.f32 %v2400_v22, %v3492_v30  ;;  %v287_v40 = vsub.f32 %v2406_v24, %v3490_v32  ;;  %v3488_v41 = vand.u32 4294901760, %v2422_v33 }
  0x17   :  { %1892 = vmatpush3.msra.mxu0 %v2385_v15  ;;  %v386_v45 = vand.u32 4294901760, %v385_v34  ;;  %v393_v47 = vand.u32 4294901760, %v392_v36  ;;  %v406_v48 = vsub.f32 %v2415_v29, %v3489_v37  ;;  %v400_v53 = vand.u32 4294901760, %v399_v39  ;;  %v90_v37 = vld [vmem:[#allocation2 + $0x18] sm:$0xff] }
  0x18   :  { %v274_v46 = vand.u32 4294901760, %v273_v35  ;;  %1893 = vmatprep.subr.mxu0 %v2396_v21  ;;  %v281_v52 = vand.u32 4294901760, %v280_v38  ;;  %v288_v54 = vand.u32 4294901760, %v287_v40  ;;  %v294_v55 = vsub.f32 %v2422_v33, %v3488_v41 }
  0x19   :  { %1894 = vmatpush3.msra.mxu0 %v2408_v25  ;;  %1922 = vmatprep.subr.mxu1 %v386_v45  ;;  %v407_v57 = vand.u32 4294901760, %v406_v48  ;;  %v2455_v58 = vand.u32 4294901760, %v114_v42  ;;  %v2457_v59 = vand.u32 4294901760, %v98_v43  ;;  %v2459_v60 = vand.u32 4294901760, %v113_v44 }
  0x1a   :  { %1923 = vmatpush3.msra.mxu1 %v274_v46  ;;  %v295_v62 = vand.u32 4294901760, %v294_v55  ;;  %v2461_v63 = vand.u32 4294901760, %v97_v49  ;;  %v2463_v2 = vand.u32 4294901760, %v112_v50  ;;  %v2465_v3 = vand.u32 4294901760, %v96_v51 }
  0x1b   :  { %1924 = vmatprep.subr.mxu1 %v393_v47  ;;  %v2468_v4 = vsub.f32 %v114_v42, %v2455_v58  ;;  %v2471_v5 = vsub.f32 %v98_v43, %v2457_v59  ;;  %v2474_v6 = vsub.f32 %v113_v44, %v2459_v60  ;;  %v2476_v10 = vand.u32 4294901760, %v111_v56  ;;  %1895 = vmatprep.subr.mxu0 %v2455_v58 }
  0x1c   :  { %1925 = vmatpush3.msra.mxu1 %v281_v52  ;;  %v2480_v11 = vsub.f32 %v97_v49, %v2461_v63  ;;  %v2483_v12 = vsub.f32 %v112_v50, %v2463_v2  ;;  %v2486_v16 = vsub.f32 %v96_v51, %v2465_v3  ;;  %v2488_v17 = vand.u32 4294901760, %v95_v61  ;;  %1896 = vmatpush3.msra.mxu0 %v2457_v59  ;;  %v110_v52 = vld [vmem:[#allocation2 + $0xb8] sm:$0xff] }
  0x1d   :  { %1926 = vmatprep.subr.mxu1 %v400_v53  ;;  %v3487_v34 = vand.u32 4294901760, %v2468_v4  ;;  %v3485_v35 = vand.u32 4294901760, %v2471_v5  ;;  %v3481_v36 = vand.u32 4294901760, %v2474_v6  ;;  %v2495_v38 = vsub.f32 %v111_v56, %v2476_v10  ;;  %1897 = vmatprep.subr.mxu0 %v2459_v60  ;;  %v94_v53 = vld [vmem:[#allocation2 + $0x38] sm:$0xff] }
  0x1e   :  { %1927 = vmatpush3.msra.mxu1 %v288_v54  ;;  %v3479_v39 = vand.u32 4294901760, %v2480_v11  ;;  %v3478_v40 = vand.u32 4294901760, %v2483_v12  ;;  %v3477_v42 = vand.u32 4294901760, %v2486_v16  ;;  %v2502_v43 = vsub.f32 %v95_v61, %v2488_v17  ;;  %1898 = vmatpush3.msra.mxu0 %v2461_v63  ;;  %v109_v54 = vld [vmem:[#allocation2 + $0xb0] sm:$0xff] }
  0x1f   :  { %1928 = vmatprep.subr.mxu1 %v407_v57  ;;  %v413_v44 = vsub.f32 %v2468_v4, %v3487_v34  ;;  %v301_v45 = vsub.f32 %v2471_v5, %v3485_v35  ;;  %v420_v46 = vsub.f32 %v2474_v6, %v3481_v36  ;;  %v3480_v47 = vand.u32 4294901760, %v2495_v38  ;;  %1899 = vmatprep.subr.mxu0 %v2463_v2 }
  0x20   :  { %3605 = vst [vmem:[#allocation5_spill] sm:$0xff] %v2502_v43  ;;  %1929 = vmatpush3.msra.mxu1 %v295_v62  ;;  %v308_v48 = vsub.f32 %v2480_v11, %v3479_v39  ;;  %v427_v49 = vsub.f32 %v2483_v12, %v3478_v40  ;;  %v315_v50 = vsub.f32 %v2486_v16, %v3477_v42  ;;  %v3482_v51 = vand.u32 4294901760, %v2502_v43 }
  0x21   :  { %1900 = vmatpush3.msra.mxu0 %v2465_v3  ;;  %v414_v55 = vand.u32 4294901760, %v413_v44  ;;  %v302_v56 = vand.u32 4294901760, %v301_v45  ;;  %v421_v57 = vand.u32 4294901760, %v420_v46  ;;  %v434_v61 = vsub.f32 %v2495_v38, %v3480_v47 }
  0x22   :  { %1901 = vmatprep.subr.mxu0 %v2476_v10  ;;  %v309_v62 = vand.u32 4294901760, %v308_v48  ;;  %v322_v42 = vsub.f32 %v2502_v43, %v3482_v51  ;;  %v428_v40 = vand.u32 4294901760, %v427_v49  ;;  %v2535_v39 = vand.u32 4294901760, %v110_v52 }
  0x23   :  { %1902 = vmatpush3.msra.mxu0 %v2488_v17  ;;  %1930 = vmatprep.subr.mxu1 %v414_v55  ;;  %v2537_v44 = vand.u32 4294901760, %v94_v53  ;;  %v2539_v45 = vand.u32 4294901760, %v109_v54  ;;  %v316_v46 = vand.u32 4294901760, %v315_v50  ;;  %v435_v47 = vand.u32 4294901760, %v434_v61 }
  0x24   :  { %1931 = vmatpush3.msra.mxu1 %v302_v56  ;;  %v2542_v48 = vsub.f32 %v110_v52, %v2535_v39  ;;  %1903 = vmatprep.subr.mxu0 %v2535_v39  ;;  %v323_v49 = vand.u32 4294901760, %v322_v42  ;;  %v2602_v30 = vand.u32 4294901760, %v90_v37 }
  0x25   :  { %1932 = vmatprep.subr.mxu1 %v421_v57  ;;  %v2545_v36 = vsub.f32 %v94_v53, %v2537_v44  ;;  %v2548_v51 = vsub.f32 %v109_v54, %v2539_v45  ;;  %1904 = vmatpush3.msra.mxu0 %v2537_v44 }
  0x26   :  { %3606 = vst [vmem:[#allocation6_spill] sm:$0xff] %v2542_v48  ;;  %1933 = vmatpush3.msra.mxu1 %v309_v62  ;;  %v3483_v50 = vand.u32 4294901760, %v2542_v48  ;;  %1905 = vmatprep.subr.mxu0 %v2539_v45  ;;  %v108_v62 = vld [vmem:[#allocation2 + $0xa8] sm:$0xff]  ;;  %3616 = vst [vmem:[#allocation16_spill] sm:$0xff] %v2602_v30 }
  0x27   :  { %3607 = vst [vmem:[#allocation7_spill] sm:$0xff] %v2545_v36  ;;  %3608 = vst [vmem:[#allocation8_spill] sm:$0xff] %v2548_v51  ;;  %1934 = vmatprep.subr.mxu1 %v428_v40  ;;  %v3484_v55 = vand.u32 4294901760, %v2545_v36  ;;  %v3486_v52 = vand.u32 4294901760, %v2548_v51 }
  0x28   :  { %1935 = vmatpush3.msra.mxu1 %v316_v46  ;;  %v441_v53 = vsub.f32 %v2542_v48, %v3483_v50  ;;  %v2567_v46 = vand.u32 4294901760, %v108_v62  ;;  %v92_v50 = vld [vmem:[#allocation2 + $0x28] sm:$0xff] }
  0x29   :  { %1936 = vmatprep.subr.mxu1 %v435_v47  ;;  %v329_v42 = vsub.f32 %v2545_v36, %v3484_v55  ;;  %v448_v40 = vsub.f32 %v2548_v51, %v3486_v52  ;;  %v93_v47 = vld [vmem:[#allocation2 + $0x30] sm:$0xff]  ;;  %v2572_v35 = vand.u32 4294901760, %v92_v50  ;;  %v107_v52 = vld [vmem:[#allocation2 + $0xa0] sm:$0xff]  ;;  %v2620_v36 = vsub.f32 %v90_v37, %v2602_v30 }
  0x2a   :  { %1937 = vmatpush3.msra.mxu1 %v323_v49  ;;  %v442_v54 = vand.u32 4294901760, %v441_v53  ;;  %v2565_v61 = vand.u32 4294901760, %v93_v47  ;;  %v2576_v49 = vsub.f32 %v108_v62, %v2567_v46  ;;  %v2578_v53 = vand.u32 4294901760, %v107_v52 }
  0x2b   :  { %v330_v56 = vand.u32 4294901760, %v329_v42  ;;  %v449_v57 = vand.u32 4294901760, %v448_v40  ;;  %v91_v42 = vld [vmem:[#allocation2 + $0x20] sm:$0xff]  ;;  %3619 = vst [vmem:[#allocation19_spill] sm:$0xff] %v2620_v36 }
  0x2c   :  { %1938 = vmatprep.subr.mxu1 %v442_v54  ;;  %v2570_v55 = vsub.f32 %v93_v47, %v2565_v61  ;;  %1906 = vmatpush3.msra.mxu0 %v2565_v61  ;;  %3610 = vst [vmem:[#allocation10_spill] sm:$0xff] %v2576_v49  ;;  %v2583_v54 = vsub.f32 %v92_v50, %v2572_v35  ;;  %v41_v47 = vlaneseq  ;;  %v3503_v34 = vand.u32 4294901760, %v2576_v49 }
  0x2d   :  { %1939 = vmatpush3.msra.mxu1 %v330_v56  ;;  %1907 = vmatprep.subr.mxu0 %v2567_v46  ;;  %v2585_v56 = vand.u32 4294901760, %v91_v42  ;;  %v2590_v62 = vsub.f32 %v107_v52, %v2578_v53 }
  0x2e   :  { %1940 = vmatprep.subr.mxu1 %v449_v57  ;;  %3609 = vst [vmem:[#allocation9_spill] sm:$0xff] %v2570_v55  ;;  %v3496_v40 = vand.u32 4294901760, %v2570_v55  ;;  %3611 = vst [vmem:[#allocation11_spill] sm:$0xff] %v2583_v54  ;;  %v106_v57 = vld [vmem:[#allocation2 + $0x98] sm:$0xff]  ;;  %1908 = vmatpush3.msra.mxu0 %v2572_v35  ;;  %v3512_v32 = vand.u32 4294901760, %v2583_v54  ;;  %v455_v52 = vsub.f32 %v2576_v49, %v3503_v34  ;;  %v89_v34 = vld [vmem:[#allocation2 + $0x10] sm:$0xff] }
  0x2f   :  { %3612 = vst [vmem:[#allocation12_spill] sm:$0xff] %v2585_v56  ;;  %3613 = vst [vmem:[#allocation13_spill] sm:$0xff] %v2590_v62  ;;  %v2592_v41 = vand.u32 4294901760, %v106_v57  ;;  %1909 = vmatprep.subr.mxu0 %v2578_v53  ;;  %v2600_v31 = vsub.f32 %v91_v42, %v2585_v56  ;;  %v104_v49 = vld [vmem:[#allocation2 + $0x88] sm:$0xff]  ;;  %v3620_v48 = vand.u32 4294901760, %v2590_v62 }
  0x30   :  { %v336_v50 = vsub.f32 %v2570_v55, %v3496_v40  ;;  %1910 = vmatpush3.msra.mxu0 %v2585_v56  ;;  %v2612_v40 = vand.u32 4294901760, %v105_v28  ;;  %v343_v55 = vsub.f32 %v2583_v54, %v3512_v32  ;;  %v456_v27 = vand.u32 4294901760, %v455_v52  ;;  %v88_v56 = vld [vmem:[#allocation2 + $0x8] sm:$0xff]  ;;  %v103_v52 = vld [vmem:[#allocation2 + $0x80] sm:$0xff] }
  0x31   :  { %3614 = vst [vmem:[#allocation14_spill] sm:$0xff] %v2592_v41  ;;  %3615 = vst [vmem:[#allocation15_spill] sm:$0xff] %v2600_v31  ;;  %v2610_v26 = vsub.f32 %v106_v57, %v2592_v41  ;;  %1911 = vmatprep.subr.mxu0 %v2592_v41  ;;  %v3521_v51 = vand.u32 4294901760, %v2600_v31  ;;  %v2623_v57 = vand.u32 127, %v41_v47  ;;  %v3529_v54 = vand.u32 4294901760, %v2620_v36 }
  0x32   :  { %3618 = vst [vmem:[#allocation18_spill] sm:$0xff] %v2612_v40  ;;  %v337_v42 = vand.u32 4294901760, %v336_v50  ;;  %1912 = vmatpush3.msra.mxu0 %v2602_v30  ;;  %v462_v50 = vsub.f32 %v2590_v62, %v3620_v48  ;;  %v344_v32 = vand.u32 4294901760, %v343_v55  ;;  %v2635_v47 = vsub.f32 %v105_v28, %v2612_v40  ;;  %v87_v55 = vld [vmem:[#allocation2] sm:$0xff] }
  0x33   :  { %3617 = vst [vmem:[#allocation17_spill] sm:$0xff] %v2610_v26  ;;  %v3526_v41 = vand.u32 4294901760, %v2610_v26  ;;  %1913 = vmatprep.subr.mxu0 %v2612_v40  ;;  %v350_v37 = vsub.f32 %v2600_v31, %v3521_v51  ;;  %v2640_v62 = vand.u32 4294901760, %v89_v34  ;;  %v357_v51 = vsub.f32 %v2620_v36, %v3529_v54 }
  0x34   :  { %1941 = vmatpush3.msra.mxu1 %v337_v42  ;;  %3621 = vst [vmem:[#allocation20_spill] sm:$0xff] %v2635_v47  ;;  %v463_v30 = vand.u32 4294901760, %v462_v50  ;;  %v2642_v42 = vand.u32 4294901760, %v104_v49  ;;  %v3532_v28 = vand.u32 4294901760, %v2635_v47  ;;  %v2648_v31 = vand.u32 4294901760, %v88_v56 }
  0x35   :  { %1942 = vmatprep.subr.mxu1 %v456_v27  ;;  %v469_v48 = vsub.f32 %v2610_v26, %v3526_v41  ;;  %3622 = vst [vmem:[#allocation21_spill] sm:$0xff] %v2640_v62  ;;  %v351_v43 = vand.u32 4294901760, %v350_v37  ;;  %v2651_v41 = vsub.f32 %v89_v34, %v2640_v62  ;;  %1914 = vmatpush3.msra.mxu0 %v2640_v62  ;;  %v358_v37 = vand.u32 4294901760, %v357_v51 }
  0x36   :  { %3623 = vst [vmem:[#allocation22_spill] sm:$0xff] %v2642_v42  ;;  %1943 = vmatpush3.msra.mxu1 %v344_v32  ;;  %3624 = vst [vmem:[#allocation23_spill] sm:$0xff] %v2648_v31  ;;  %v2654_v26 = vsub.f32 %v104_v49, %v2642_v42  ;;  %v2656_v32 = vand.u32 4294901760, %v103_v52  ;;  %v476_v54 = vsub.f32 %v2635_v47, %v3532_v28  ;;  %1915 = vmatprep.subr.mxu0 %v2642_v42 }
  0x37   :  { %1944 = vmatprep.subr.mxu1 %v463_v30  ;;  %v470_v40 = vand.u32 4294901760, %v469_v48  ;;  %3625 = vst [vmem:[#allocation24_spill] sm:$0xff] %v2651_v41  ;;  %v2663_v36 = vsub.f32 %v88_v56, %v2648_v31  ;;  %v2665_v30 = vand.u32 4294901760, %v87_v55  ;;  %vm43_vm0 = vcmp.lt.s32.totalorder %v2623_v57, 127  ;;  %1916 = vmatpush3.msra.mxu0 %v2648_v31 }
  0x38   :  { %3626 = vst [vmem:[#allocation25_spill] sm:$0xff] %v2654_v26  ;;  %3627 = vst [vmem:[#allocation26_spill] sm:$0xff] %v2656_v32  ;;  %1945 = vmatpush3.msra.mxu1 %v351_v43  ;;  %v3535_v34 = vand.u32 4294901760, %v2651_v41  ;;  %v2672_v43 = vsub.f32 %v103_v52, %v2656_v32  ;;  %v477_v51 = vand.u32 4294901760, %v476_v54  ;;  %1917 = vmatprep.subr.mxu0 %v2656_v32  ;;  %v3629_v52 = vand.u32 4294901760, %v2654_v26 }
  0x39   :  { %3628 = vst [vmem:[#allocation27_spill] sm:$0xff] %v2665_v30  ;;  %1946 = vmatprep.subr.mxu1 %v470_v40  ;;  %v2677_v48 = vsub.f32 %v87_v55, %v2665_v30  ;;  %1918 = vmatpush3.msra.mxu0 %v2665_v30  ;;  %vm72_vm1 = vcmp.lt.s32.totalorder %v2623_v57, 112 }
  0x3a   :  { %1947 = vmatpush3.msra.mxu1 %v358_v37  ;;  %v364_v49 = vsub.f32 %v2651_v41, %v3535_v34  ;;  %v483_v47 = vsub.f32 %v2654_v26, %v3629_v52  ;;  %1957 = vmatprep.subr.mxu0 %v2388_v18  ;;  %v3630_v37 = vand.u32 4294901760, %v2663_v36  ;;  %v3631_v31 = vand.u32 4294901760, %v2672_v43 }
  0x3b   :  { %1948 = vmatprep.subr.mxu1 %v477_v51 }
  0x3c   :  { %v365_v52 = vand.u32 4294901760, %v364_v49  ;;  %v484_v26 = vand.u32 4294901760, %v483_v47  ;;  %v371_v30 = vsub.f32 %v2663_v36, %v3630_v37 }
  0x3e   :  { %1949 = vmatpush3.msra.mxu1 %v365_v52 }
  0x3f   :  { %1950 = vmatprep.subr.mxu1 %v484_v26  ;;  %v3647_v52 = vld [vmem:[#allocation26_spill] sm:$0xff] }
  0x80   :  { %v38_v27 = vpop.permute.xlu1 %37  ;;  %v34_v50 = vpop.permute.xlu0 %33 }
  0x84   :  { %v40_v28 = vpop.permute.xlu1 %39  ;;  %v36_v40 = vpop.permute.xlu0 %35 }
  0x85   :  { %v44_v54 = vsel %vm43_vm0, %v38_v27, %v40_v28  ;;  %v47_v55 = vsel %vm43_vm0, %v40_v28, %v34_v50  ;;  %v45_v56 = vsel %vm43_vm0, %v36_v40, %v38_v27  ;;  %v46_v34 = vsel %vm43_vm0, %v34_v50, %v36_v40 }
  0x86   :  { %v53_v41 = vcombine.low %v44_v54, %v47_v55  ;;  %v52_v32 = vcombine.low %v46_v34, %v45_v56  ;;  %v490_v28 = vsub.f32 %v2672_v43, %v3631_v31  ;;  %v3548_v27 = vand.u32 4294901760, %v2677_v48 }
  0x87   :  { %v372_v50 = vand.u32 4294901760, %v371_v30 }
  0x88   :  { %v56_v42 = vmax.f32 %v2367_v1, %v52_v32  ;;  %v491_v34 = vand.u32 4294901760, %v490_v28  ;;  %v378_v47 = vsub.f32 %v2677_v48, %v3548_v27  ;;  %v2709_v51 = vmax.f32 %v2362_v0, %v53_v41  ;;  %v3646_v27 = vld [vmem:[#allocation13_spill] sm:$0xff] }
  0x89   :  { %1951 = vmatpush3.msra.mxu1 %v372_v50 }
  0x8a   :  { %64 = vrot.lane.b32.xlu0 %v56_v42, %s2340_s0  ;;  %v60_v49 = vcombine.high %v56_v42, %v56_v42  ;;  %v379_v31 = vand.u32 4294901760, %v378_v47  ;;  %1952 = vmatprep.subr.mxu1 %v491_v34  ;;  %v61_v1 = vcombine.high %v2709_v51, %v2709_v51 }
  0x8c   :  { %66 = vrot.lane.b32.xlu1 %v60_v49, %s2340_s0  ;;  %1953 = vmatpush3.msra.mxu1 %v379_v31 }
  0x8d   :  { %1992 = vmatprep.subr.mxu1 %v2375_v7 }
  0x8e   :  { %68 = vrot.lane.b32.xlu0 %v2709_v51, %s2340_s0 }
  0x90   :  { %70 = vrot.lane.b32.xlu1 %v61_v1, %s2340_s0 }
  0xfc   :  { %v65_v26 = vpop.permute.xlu0 %64 }
  0xfe   :  { %v67_v32 = vpop.permute.xlu1 %66 }
  0xff   :  { %v75_v0 = vsel %vm72_vm1, %v65_v26, %v67_v32 }
 0x100   :  { %v69_v30 = vpop.permute.xlu0 %68 }
 0x101   :  { %v74_v41 = vsel %vm72_vm1, %v67_v32, %v69_v30 }
 0x102   :  { %v81_v56 = vcombine.low %v75_v0, %v74_v41  ;;  %v71_v40 = vpop.permute.xlu1 %70  ;;  %v3634_v0 = vld [vmem:[#allocation12_spill] sm:$0xff]  ;;  %v3635_v41 = vld [vmem:[#allocation6_spill] sm:$0xff] }
 0x103   :  { %v2716_v37 = vsel %vm72_vm1, %v69_v30, %v71_v40  ;;  %v2718_v54 = vsel %vm72_vm1, %v71_v40, %v65_v26  ;;  %v3633_v30 = vld [vmem:[#allocation5_spill] sm:$0xff]  ;;  %v3637_v40 = vld [vmem:[#allocation7_spill] sm:$0xff] }
 0x104   :  { %v85_v55 = vmax.f32 %v56_v42, %v81_v56  ;;  %v3636_v56 = vld [vmem:[#allocation14_spill] sm:$0xff] }
 0x106   :  { %v153_v28 = vcombine.high %v85_v55, %v85_v55  ;;  %v2722_v50 = vand.u32 4294901760, %v85_v55 }
 0x108   :  { %3632 = vst [vmem:[#allocation28_spill] sm:$0xff] %v2722_v50  ;;  %v2724_v34 = vand.u32 4294901760, %v153_v28  ;;  %v2727_v57 = vsub.f32 %v85_v55, %v2722_v50  ;;  %v3638_v55 = vld [vmem:[#allocation16_spill] sm:$0xff] }
 0x10a   :  { %494 = vmatprep.mubr.f32.mxu1 %v2724_v34  ;;  %v254_v47 = vsub.f32 %v153_v28, %v2724_v34  ;;  %v3549_v49 = vand.u32 4294901760, %v2727_v57  ;;  %v3639_v28 = vld [vmem:[#allocation8_spill] sm:$0xff] }
 0x10b   :  { %496 = vmatmul.mubr.f32.vlgmr.msra.gmra.mxu1 %v2722_v50  ;;  %v3649_v50 = vld [vmem:[#allocation27_spill] sm:$0xff] }
 0x10c   :  { %1993 = vmatpush3.msra.mxu1 %v2377_v8  ;;  %v255_v42 = vand.u32 4294901760, %v254_v47  ;;  %v262_v31 = vsub.f32 %v2727_v57, %v3549_v49  ;;  %v3648_v49 = vld [vmem:[#allocation15_spill] sm:$0xff] }
 0x10d   :  { %1994 = vmatprep.subr.mxu1 %v2379_v9 }
 0x10e   :  { %1995 = vmatpush3.msra.mxu1 %v2381_v13  ;;  %738 = vmatprep.mubr.f32.mxu1 %v255_v42  ;;  %v256_v1 = vsub.f32 %v254_v47, %v255_v42  ;;  %v263_v32 = vand.u32 4294901760, %v262_v31  ;;  %v3641_v42 = vld [vmem:[#allocation9_spill] sm:$0xff]  ;;  %v3642_v31 = vld [vmem:[#allocation10_spill] sm:$0xff] }
 0x10f   :  { %1996 = vmatprep.subr.mxu1 %v2383_v14 }
 0x110   :  { %1997 = vmatpush3.msra.mxu1 %v2385_v15  ;;  %v257_v26 = vand.u32 4294901760, %v256_v1  ;;  %v3643_v1 = vld [vmem:[#allocation22_spill] sm:$0xff] }
 0x111   :  { %1998 = vmatprep.subr.mxu1 %v2396_v21 }
 0x112   :  { %1999 = vmatpush3.msra.mxu1 %v2408_v25  ;;  %258 = vmatprep.mubr.f32.mxu0 %v257_v26  ;;  %v3644_v26 = vld [vmem:[#allocation11_spill] sm:$0xff] }
 0x113   :  { %2000 = vmatprep.subr.mxu1 %v2455_v58  ;;  %264 = vmatmul.mubr.f32.vlgmr.msra.gmra.mxu0 %v263_v32  ;;  %v3645_v32 = vld [vmem:[#allocation23_spill] sm:$0xff] }
 0x114   :  { %1958 = vmatpush3.msra.mxu0 %v2391_v19  ;;  %2001 = vmatpush3.msra.mxu1 %v2457_v59 }
 0x115   :  { %1959 = vmatprep.subr.mxu0 %v2394_v20  ;;  %631 = vmatprep.mubr.f32.mxu0 %v254_v47  ;;  %v3640_v47 = vld [vmem:[#allocation18_spill] sm:$0xff] }
 0x116   :  { %2002 = vmatprep.subr.mxu1 %v2459_v60  ;;  %1960 = vmatpush3.msra.mxu0 %v2400_v22 }
 0x117   :  { %2003 = vmatpush3.msra.mxu1 %v2461_v63  ;;  %1961 = vmatprep.subr.mxu0 %v2403_v23 }
 0x118   :  { %2004 = vmatprep.subr.mxu1 %v2463_v2  ;;  %1962 = vmatpush3.msra.mxu0 %v2406_v24 }
 0x119   :  { %2005 = vmatpush3.msra.mxu1 %v2465_v3  ;;  %1963 = vmatprep.subr.mxu0 %v2415_v29 }
 0x11a   :  { %2006 = vmatprep.subr.mxu1 %v2476_v10  ;;  %1964 = vmatpush3.msra.mxu0 %v2422_v33 }
 0x11b   :  { %2007 = vmatpush3.msra.mxu1 %v2488_v17  ;;  %1965 = vmatprep.subr.mxu0 %v2468_v4 }
 0x11c   :  { %2008 = vmatprep.subr.mxu1 %v2535_v39  ;;  %1966 = vmatpush3.msra.mxu0 %v2471_v5 }
 0x11d   :  { %2009 = vmatpush3.msra.mxu1 %v2537_v44  ;;  %1967 = vmatprep.subr.mxu0 %v2474_v6 }
 0x11e   :  { %2010 = vmatprep.subr.mxu1 %v2539_v45  ;;  %1968 = vmatpush3.msra.mxu0 %v2480_v11 }
 0x11f   :  { %2011 = vmatpush3.msra.mxu1 %v2565_v61  ;;  %1969 = vmatprep.subr.mxu0 %v2483_v12 }
 0x120   :  { %2012 = vmatprep.subr.mxu1 %v2567_v46  ;;  %1970 = vmatpush3.msra.mxu0 %v2486_v16 }
 0x121   :  { %2013 = vmatpush3.msra.mxu1 %v2572_v35  ;;  %1971 = vmatprep.subr.mxu0 %v2495_v38 }
 0x122   :  { %2014 = vmatprep.subr.mxu1 %v2578_v53  ;;  %1972 = vmatpush3.msra.mxu0 %v3633_v30 }
 0x123   :  { %2015 = vmatpush3.msra.mxu1 %v3634_v0  ;;  %1973 = vmatprep.subr.mxu0 %v3635_v41 }
 0x124   :  { %2016 = vmatprep.subr.mxu1 %v3636_v56  ;;  %1974 = vmatpush3.msra.mxu0 %v3637_v40 }
 0x125   :  { %2017 = vmatpush3.msra.mxu1 %v3638_v55  ;;  %1975 = vmatprep.subr.mxu0 %v3639_v28 }
 0x126   :  { %2018 = vmatprep.subr.mxu1 %v3640_v47  ;;  %1976 = vmatpush3.msra.mxu0 %v3641_v42  ;;  %v3650_v47 = vld [vmem:[#allocation17_spill] sm:$0xff] }
 0x127   :  { %2019 = vmatpush3.msra.mxu1 %v2640_v62  ;;  %1977 = vmatprep.subr.mxu0 %v3642_v31  ;;  %v3651_v62 = vand.u32 4294901760, %v2727_v57 }
 0x128   :  { %2020 = vmatprep.subr.mxu1 %v3643_v1  ;;  %1978 = vmatpush3.msra.mxu0 %v3644_v26  ;;  %v3652_v1 = vld [vmem:[#allocation19_spill] sm:$0xff] }
 0x129   :  { %2021 = vmatpush3.msra.mxu1 %v3645_v32  ;;  %1979 = vmatprep.subr.mxu0 %v3646_v27  ;;  %v3653_v27 = vld [vmem:[#allocation20_spill] sm:$0xff] }
 0x12a   :  { %2022 = vmatprep.subr.mxu1 %v3647_v52  ;;  %1980 = vmatpush3.msra.mxu0 %v3648_v49  ;;  %v3654_v49 = vld [vmem:[#allocation24_spill] sm:$0xff] }
 0x12b   :  { %2023 = vmatpush3.msra.mxu1 %v3649_v50  ;;  %1981 = vmatprep.subr.mxu0 %v3650_v47  ;;  %v3655_v47 = vld [vmem:[#allocation25_spill] sm:$0xff] }
 0x12c   :  { %742 = vmatmul.mubr.f32.vlgmr.msra.gmra.mxu1 %v3651_v62  ;;  %2062 = vmatprep.subr.mxu1 %v2375_v7  ;;  %v150_v7 = vld [vmem:[#allocation2 + $0x1f8] sm:$0xff]  ;;  %v133_v62 = vld [vmem:[#allocation2 + $0x170] sm:$0xff] }
 0x12d   :  { %1982 = vmatpush3.msra.mxu0 %v3652_v1  ;;  %2063 = vmatpush3.msra.mxu1 %v2377_v8  ;;  %v2810_v8 = vand.u32 4294901760, %v150_v7 }
 0x12e   :  { %1012 = vmatprep.mubr.f32.mxu1 %v2724_v34  ;;  %1983 = vmatprep.subr.mxu0 %v3653_v27 }
 0x12f   :  { %2064 = vmatprep.subr.mxu1 %v2379_v9  ;;  %1984 = vmatpush3.msra.mxu0 %v3654_v49  ;;  %v134_v9 = vld [vmem:[#allocation2 + $0x178] sm:$0xff] }
 0x130   :  { %2065 = vmatpush3.msra.mxu1 %v2381_v13  ;;  %1985 = vmatprep.subr.mxu0 %v3655_v47  ;;  %v3656_v13 = vand.u32 4294901760, %v2388_v18  ;;  %v3659_v18 = vand.u32 4294901760, %v2400_v22  ;;  %v147_v22 = vld [vmem:[#allocation2 + $0x1e0] sm:$0xff] }
 0x131   :  { %2066 = vmatprep.subr.mxu1 %v2383_v14  ;;  %1986 = vmatpush3.msra.mxu0 %v2663_v36  ;;  %v3657_v14 = vand.u32 4294901760, %v2391_v19  ;;  %v148_v19 = vld [vmem:[#allocation2 + $0x1e8] sm:$0xff] }
 0x132   :  { %2067 = vmatpush3.msra.mxu1 %v2385_v15  ;;  %1987 = vmatprep.subr.mxu0 %v2672_v43  ;;  %v149_v15 = vld [vmem:[#allocation2 + $0x1f0] sm:$0xff] }
 0x133   :  { %2068 = vmatprep.subr.mxu1 %v2396_v21  ;;  %1988 = vmatpush3.msra.mxu0 %v2677_v48  ;;  %v3658_v21 = vand.u32 4294901760, %v2394_v20  ;;  %v132_v20 = vld [vmem:[#allocation2 + $0x168] sm:$0xff] }
 0x134   :  { %2069 = vmatpush3.msra.mxu1 %v2408_v25  ;;  %634 = vmatmul.mubr.f32.vlgmr.msra.gmra.mxu0 %v2727_v57  ;;  %v2821_v25 = vand.u32 4294901760, %v134_v9  ;;  %v3661_v57 = vand.u32 4294901760, %v2406_v24 }
 0x135   :  { %2027 = vmatprep.subr.mxu0 %v3656_v13  ;;  %2070 = vmatprep.subr.mxu1 %v2455_v58  ;;  %v2827_v58 = vsub.f32 %v150_v7, %v2810_v8  ;;  %v3662_v7 = vand.u32 4294901760, %v2415_v29  ;;  %v131_v13 = vld [vmem:[#allocation2 + $0x160] sm:$0xff]  ;;  %v3665_v29 = vand.u32 4294901760, %v2468_v4 }
 0x136   :  { %2028 = vmatpush3.msra.mxu0 %v3657_v14  ;;  %908 = vmatprep.mubr.f32.mxu0 %v2724_v34  ;;  %v3660_v34 = vand.u32 4294901760, %v2403_v23  ;;  %v2845_v23 = vand.u32 4294901760, %v148_v19  ;;  %v2851_v14 = vand.u32 4294901760, %v132_v20 }
 0x137   :  { %2071 = vmatpush3.msra.mxu1 %v2457_v59  ;;  %2029 = vmatprep.subr.mxu0 %v3658_v21  ;;  %v2832_v59 = vand.u32 4294901760, %v149_v15  ;;  %v3554_v24 = vand.u32 4294901760, %v2827_v58  ;;  %v146_v21 = vld [vmem:[#allocation2 + $0x1d8] sm:$0xff] }
 0x138   :  { %2072 = vmatprep.subr.mxu1 %v2459_v60  ;;  %2030 = vmatpush3.msra.mxu0 %v3659_v18  ;;  %v2837_v60 = vand.u32 4294901760, %v133_v62  ;;  %v130_v18 = vld [vmem:[#allocation2 + $0x158] sm:$0xff] }
 0x139   :  { %2073 = vmatpush3.msra.mxu1 %v2461_v63  ;;  %2031 = vmatprep.subr.mxu0 %v3660_v34  ;;  %v2843_v63 = vsub.f32 %v134_v9, %v2821_v25  ;;  %v2859_v9 = vand.u32 4294901760, %v147_v22  ;;  %v3668_v34 = vand.u32 4294901760, %v2471_v5  ;;  %v129_v5 = vld [vmem:[#allocation2 + $0x150] sm:$0xff] }
 0x13a   :  { %2074 = vmatprep.subr.mxu1 %v2463_v2  ;;  %2032 = vmatpush3.msra.mxu0 %v3661_v57  ;;  %v3664_v2 = vand.u32 4294901760, %v2422_v33  ;;  %v3667_v33 = vcombine.low %v2716_v37, %v2718_v54  ;;  %v2871_v4 = vsub.f32 %v133_v62, %v2837_v60  ;;  %v3670_v57 = vand.u32 4294901760, %v2474_v6 }
 0x13b   :  { %2075 = vmatpush3.msra.mxu1 %v2465_v3  ;;  %2033 = vmatprep.subr.mxu0 %v3662_v7  ;;  %3663 = vst [vmem:[#allocation5_spill] sm:$0xff] %v2843_v63  ;;  %v2857_v3 = vsub.f32 %v149_v15, %v2832_v59  ;;  %v145_v15 = vld [vmem:[#allocation2 + $0x1d0] sm:$0xff]  ;;  %v3553_v37 = vand.u32 4294901760, %v2843_v63  ;;  %v3672_v54 = vand.u32 4294901760, %v2480_v11  ;;  %v2893_v6 = vsub.f32 %v132_v20, %v2851_v14 }
 0x13c   :  { %2076 = vmatprep.subr.mxu1 %v2476_v10  ;;  %2034 = vmatpush3.msra.mxu0 %v3664_v2  ;;  %v2865_v10 = vmax.f32 %v2709_v51, %v3667_v33  ;;  %3669 = vst [vmem:[#allocation6_spill] sm:$0xff] %v2871_v4  ;;  %v2880_v51 = vsub.f32 %v148_v19, %v2845_v23  ;;  %v2895_v62 = vand.u32 4294901760, %v130_v18  ;;  %v144_v19 = vld [vmem:[#allocation2 + $0x1c8] sm:$0xff]  ;;  %v3674_v7 = vand.u32 4294901760, %v2483_v12 }
 0x13d   :  { %2077 = vmatpush3.msra.mxu1 %v2488_v17  ;;  %2035 = vmatprep.subr.mxu0 %v3665_v29  ;;  %3666 = vst [vmem:[#allocation12_spill] sm:$0xff] %v2857_v3  ;;  %v2873_v17 = vand.u32 4294901760, %v131_v13  ;;  %3673 = vst [vmem:[#allocation7_spill] sm:$0xff] %v2893_v6  ;;  %v2902_v11 = vsub.f32 %v147_v22, %v2859_v9  ;;  %v2904_v2 = vand.u32 4294901760, %v145_v15  ;;  %v128_v29 = vld [vmem:[#allocation2 + $0x148] sm:$0xff]  ;;  %v3676_v33 = vand.u32 4294901760, %v2486_v16 }
 0x13e   :  { %2078 = vmatprep.subr.mxu1 %v2535_v39  ;;  %2036 = vmatpush3.msra.mxu0 %v3668_v34  ;;  %3671 = vst [vmem:[#allocation14_spill] sm:$0xff] %v2880_v51  ;;  %v2882_v39 = vand.u32 4294901760, %v146_v21  ;;  %v154_v20 = vcombine.high %v2865_v10, %v2865_v10  ;;  %v2915_v34 = vand.u32 4294901760, %v129_v5  ;;  %v143_v22 = vld [vmem:[#allocation2 + $0x1c0] sm:$0xff]  ;;  %v3557_v16 = vand.u32 4294901760, %v2880_v51 }
 0x13f   :  { %2079 = vmatpush3.msra.mxu1 %v2537_v44  ;;  %2037 = vmatprep.subr.mxu0 %v3670_v57  ;;  %v2890_v44 = vsub.f32 %v2827_v58, %v3554_v24  ;;  %3675 = vst [vmem:[#allocation16_spill] sm:$0xff] %v2902_v11  ;;  %v2913_v12 = vsub.f32 %v131_v13, %v2873_v17  ;;  %v3678_v57 = vand.u32 4294901760, %v2495_v38  ;;  %v2929_v13 = vand.u32 4294901760, %v144_v19 }
 0x140   :  { %2080 = vmatprep.subr.mxu1 %v2539_v45  ;;  %2038 = vmatpush3.msra.mxu0 %v3672_v54  ;;  %v3555_v45 = vand.u32 4294901760, %v2857_v3  ;;  %v2927_v54 = vsub.f32 %v146_v21, %v2882_v39  ;;  %v3558_v38 = vand.u32 4294901760, %v2893_v6  ;;  %v3682_v21 = vand.u32 4294901760, %v3635_v41 }
 0x141   :  { %2081 = vmatpush3.msra.mxu1 %v2565_v61  ;;  %2039 = vmatprep.subr.mxu0 %v3674_v7  ;;  %v3556_v61 = vand.u32 4294901760, %v2871_v4  ;;  %3677 = vst [vmem:[#allocation8_spill] sm:$0xff] %v2913_v12  ;;  %v3680_v7 = vand.u32 4294901760, %v3633_v30  ;;  %v3559_v30 = vand.u32 4294901760, %v2902_v11  ;;  %v3684_v24 = vand.u32 4294901760, %v3637_v40 }
 0x142   :  { %2082 = vmatprep.subr.mxu1 %v2567_v46  ;;  %2040 = vmatpush3.msra.mxu0 %v3676_v33  ;;  %v2923_v46 = vsub.f32 %v2843_v63, %v3553_v37  ;;  %3679 = vst [vmem:[#allocation9_spill] sm:$0xff] %v2927_v54  ;;  %v2937_v33 = vsub.f32 %v130_v18, %v2895_v62  ;;  %v127_v37 = vld [vmem:[#allocation2 + $0x140] sm:$0xff]  ;;  %v2953_v18 = vand.u32 4294901760, %v143_v22  ;;  %v3693_v40 = vand.u32 4294901760, %v3642_v31 }
 0x143   :  { %2083 = vmatpush3.msra.mxu1 %v2572_v35  ;;  %2041 = vmatprep.subr.mxu0 %v3678_v57  ;;  %v2939_v57 = vand.u32 4294901760, %v128_v29  ;;  %v2963_v41 = vsub.f32 %v2871_v4, %v3556_v61  ;;  %v2981_v61 = vand.u32 4294901760, %v127_v37  ;;  %v3689_v35 = vld [vmem:[#allocation18_spill] sm:$0xff] }
 0x144   :  { %2084 = vmatprep.subr.mxu1 %v2578_v53  ;;  %2042 = vmatpush3.msra.mxu0 %v3680_v7  ;;  %3681 = vst [vmem:[#allocation10_spill] sm:$0xff] %v2937_v33  ;;  %v2947_v53 = vsub.f32 %v2857_v3, %v3555_v45  ;;  %v2951_v7 = vsub.f32 %v145_v15, %v2904_v2  ;;  %v3687_v15 = vand.u32 4294901760, %v3639_v28 }
 0x145   :  { %2085 = vmatpush3.msra.mxu1 %v3634_v0  ;;  %2043 = vmatprep.subr.mxu0 %v3682_v21  ;;  %v2958_v0 = vand.u32 4294901760, %v154_v20  ;;  %v3560_v21 = vand.u32 4294901760, %v2913_v12  ;;  %v2967_v45 = vsub.f32 %v129_v5, %v2915_v34  ;;  %v3690_v5 = vand.u32 4294901760, %v3641_v42 }
 0x146   :  { %3683 = vst [vmem:[#allocation11_spill] sm:$0xff] %v2951_v7  ;;  %2086 = vmatprep.subr.mxu1 %v3636_v56  ;;  %2044 = vmatpush3.msra.mxu0 %v3684_v24  ;;  %v2975_v56 = vsub.f32 %v2880_v51, %v3557_v16  ;;  %v2979_v24 = vsub.f32 %v144_v19, %v2929_v13  ;;  %v3692_v19 = vld [vmem:[#allocation21_spill] sm:$0xff]  ;;  %v1255_v42 = vand.u32 4294901760, %v2947_v53  ;;  %v1143_v31 = vand.u32 4294901760, %v2963_v41 }
 0x147   :  { %3685 = vst [vmem:[#allocation23_spill] sm:$0xff] %v2958_v0  ;;  %3686 = vst [vmem:[#allocation26_spill] sm:$0xff] %v2967_v45  ;;  %2087 = vmatpush3.msra.mxu1 %v3638_v55  ;;  %2045 = vmatprep.subr.mxu0 %v3687_v15  ;;  %v1136_v55 = vand.u32 4294901760, %v2923_v46  ;;  %v2990_v28 = vsub.f32 %v2893_v6, %v3558_v38  ;;  %v2994_v16 = vsub.f32 %v128_v29, %v2939_v57  ;;  %v142_v38 = vld [vmem:[#allocation2 + $0x1b8] sm:$0xff]  ;;  %v3695_v29 = vld [vmem:[#allocation22_spill] sm:$0xff] }
 0x148   :  { %3688 = vst [vmem:[#allocation27_spill] sm:$0xff] %v2979_v24  ;;  %2088 = vmatprep.subr.mxu1 %v3689_v35  ;;  %2046 = vmatpush3.msra.mxu0 %v3690_v5  ;;  %v3003_v46 = vsub.f32 %v2902_v11, %v3559_v30  ;;  %v3007_v5 = vsub.f32 %v143_v22, %v2953_v18  ;;  %v126_v22 = vld [vmem:[#allocation2 + $0x138] sm:$0xff]  ;;  %v3697_v35 = vld [vmem:[#allocation13_spill] sm:$0xff]  ;;  %v3699_v41 = vand.u32 4294901760, %v2927_v54  ;;  %v141_v15 = vld [vmem:[#allocation2 + $0x1b0] sm:$0xff]  ;;  %v3708_v11 = vand.u32 4294901760, %v2890_v44 }
 0x149   :  { %3691 = vst [vmem:[#allocation19_spill] sm:$0xff] %v2994_v16  ;;  %2089 = vmatpush3.msra.mxu1 %v3692_v19  ;;  %2047 = vmatprep.subr.mxu0 %v3693_v40  ;;  %v3696_v19 = vand.u32 4294901760, %v3644_v26  ;;  %v3016_v53 = vsub.f32 %v2913_v12, %v3560_v21  ;;  %v3019_v40 = vsub.f32 %v154_v20, %v2958_v0  ;;  %v1262_v26 = vand.u32 4294901760, %v2975_v56  ;;  %v3701_v30 = vld [vmem:[#allocation15_spill] sm:$0xff] }
 0x14a   :  { %3694 = vst [vmem:[#allocation20_spill] sm:$0xff] %v3007_v5  ;;  %2090 = vmatprep.subr.mxu1 %v3695_v29  ;;  %v3698_v29 = vand.u32 4294901760, %v3697_v35  ;;  %v3033_v20 = vsub.f32 %v127_v37, %v2981_v61  ;;  %v1150_v35 = vand.u32 4294901760, %v2990_v28  ;;  %v3703_v56 = vand.u32 4294901760, %v2937_v33  ;;  %v125_v21 = vld [vmem:[#allocation2 + $0x130] sm:$0xff]  ;;  %v3704_v37 = vld [vmem:[#allocation17_spill] sm:$0xff] }
 0x14b   :  { %2048 = vmatpush3.msra.mxu0 %v3696_v19  ;;  %2091 = vmatpush3.msra.mxu1 %v3645_v32  ;;  %v3029_v19 = vsub.f32 %v2927_v54, %v3699_v41  ;;  %v3702_v32 = vand.u32 4294901760, %v3701_v30  ;;  %v3045_v54 = vand.u32 4294901760, %v142_v38  ;;  %v3705_v12 = vand.u32 4294901760, %v3704_v37  ;;  %v140_v41 = vld [vmem:[#allocation2 + $0x1a8] sm:$0xff] }
 0x14c   :  { %2049 = vmatprep.subr.mxu0 %v3698_v29  ;;  %3700 = vst [vmem:[#allocation24_spill] sm:$0xff] %v3033_v20  ;;  %2092 = vmatprep.subr.mxu1 %v3647_v52  ;;  %v3042_v29 = vsub.f32 %v2937_v33, %v3703_v56  ;;  %v1269_v52 = vand.u32 4294901760, %v3003_v46  ;;  %v3706_v30 = vand.u32 4294901760, %v2951_v7  ;;  %v3057_v56 = vand.u32 4294901760, %v126_v22  ;;  %v3707_v33 = vld [vmem:[#allocation28_spill] sm:$0xff] }
 0x14d   :  { %2050 = vmatpush3.msra.mxu0 %v3702_v32  ;;  %2093 = vmatpush3.msra.mxu1 %v3649_v50  ;;  %v1157_v50 = vand.u32 4294901760, %v3016_v53  ;;  %v3709_v46 = vand.u32 4294901760, %v2967_v45  ;;  %v124_v32 = vld [vmem:[#allocation2 + $0x128] sm:$0xff]  ;;  %v1276_v6 = vand.u32 4294901760, %v3029_v19  ;;  %v3711_v44 = vand.u32 4294901760, %v2979_v24  ;;  %v123_v53 = vld [vmem:[#allocation2 + $0x120] sm:$0xff] }
 0x14e   :  { %2051 = vmatprep.subr.mxu0 %v3705_v12  ;;  %v3054_v28 = vsub.f32 %v2951_v7, %v3706_v30  ;;  %1014 = vmatmul.mubr.f32.vlgmr.msra.gmra.mxu1 %v3707_v33  ;;  %v3069_v30 = vand.u32 4294901760, %v141_v15  ;;  %v3710_v7 = vand.u32 4294901760, %v3652_v1  ;;  %v3080_v12 = vand.u32 4294901760, %v125_v21 }
 0x14f   :  { %2132 = vmatprep.subr.mxu1 %v3708_v11  ;;  %v3067_v37 = vsub.f32 %v2967_v45, %v3709_v46  ;;  %v3077_v11 = vsub.f32 %v2979_v24, %v3711_v44  ;;  %v139_v46 = vld [vmem:[#allocation2 + $0x1a0] sm:$0xff]  ;;  %1356 = vmatprep.mubr.f32.mxu1 %v2958_v0  ;;  %v3712_v45 = vand.u32 4294901760, %v3653_v27  ;;  %v1164_v1 = vand.u32 4294901760, %v3042_v29 }
 0x150   :  { %2052 = vmatpush3.msra.mxu0 %v3710_v7  ;;  %2133 = vmatpush3.msra.mxu1 %v1136_v55  ;;  %v3713_v7 = vand.u32 4294901760, %v2994_v16  ;;  %v3092_v19 = vsub.f32 %v142_v38, %v3045_v54  ;;  %v3094_v44 = vand.u32 4294901760, %v140_v41  ;;  %v3716_v24 = vand.u32 4294901760, %v3654_v49  ;;  %v138_v38 = vld [vmem:[#allocation2 + $0x198] sm:$0xff] }
 0x151   :  { %2053 = vmatprep.subr.mxu0 %v3712_v45  ;;  %2134 = vmatprep.subr.mxu1 %v1255_v42  ;;  %v1283_v27 = vand.u32 4294901760, %v3054_v28  ;;  %v3717_v45 = vand.u32 4294901760, %v3007_v5  ;;  %v3107_v0 = vand.u32 4294901760, %v124_v32  ;;  %v3720_v49 = vand.u32 4294901760, %v3019_v40 }
 0x152   :  { %v3089_v55 = vsub.f32 %v2994_v16, %v3713_v7  ;;  %3714 = vst [vmem:[#allocation25_spill] sm:$0xff] %v3092_v19  ;;  %3715 = vst [vmem:[#allocation18_spill] sm:$0xff] %v3094_v44  ;;  %2054 = vmatpush3.msra.mxu0 %v3716_v24  ;;  %v3105_v7 = vsub.f32 %v126_v22, %v3057_v56  ;;  %2135 = vmatpush3.msra.mxu1 %v1143_v31  ;;  %v3719_v16 = vand.u32 4294901760, %v3655_v47  ;;  %v122_v22 = vld [vmem:[#allocation2 + $0x118] sm:$0xff] }
 0x153   :  { %v3102_v29 = vsub.f32 %v3007_v5, %v3717_v45  ;;  %v1118_v24 = vsub.f32 %v3019_v40, %v3720_v49  ;;  %v1171_v42 = vand.u32 4294901760, %v3067_v37  ;;  %v3116_v28 = vsub.f32 %v141_v15, %v3069_v30  ;;  %2136 = vmatprep.subr.mxu1 %v1262_v26  ;;  %v137_v15 = vld [vmem:[#allocation2 + $0x190] sm:$0xff] }
 0x154   :  { %3718 = vst [vmem:[#allocation21_spill] sm:$0xff] %v3105_v7  ;;  %2055 = vmatprep.subr.mxu0 %v3719_v16  ;;  %v3118_v45 = vand.u32 4294901760, %v139_v46  ;;  %v3722_v5 = vand.u32 4294901760, %v2663_v36  ;;  %v1290_v31 = vand.u32 4294901760, %v3077_v11  ;;  %v3723_v47 = vand.u32 4294901760, %v3033_v20  ;;  %2137 = vmatpush3.msra.mxu1 %v1150_v35 }
 0x155   :  { %3721 = vst [vmem:[#allocation22_spill] sm:$0xff] %v3116_v28  ;;  %v3129_v49 = vsub.f32 %v125_v21, %v3080_v12  ;;  %v3131_v37 = vand.u32 4294901760, %v123_v53  ;;  %v3724_v51 = vand.u32 4294901760, %v2672_v43  ;;  %v1178_v36 = vand.u32 4294901760, %v3089_v55  ;;  %2138 = vmatprep.subr.mxu1 %v1269_v52  ;;  %v136_v55 = vld [vmem:[#allocation2 + $0x188] sm:$0xff] }
 0x156   :  { %2056 = vmatpush3.msra.mxu0 %v3722_v5  ;;  %v3126_v16 = vsub.f32 %v3033_v20, %v3723_v47  ;;  %v3138_v26 = vsub.f32 %v140_v41, %v3094_v44  ;;  %v3140_v11 = vand.u32 4294901760, %v138_v38  ;;  %v121_v47 = vld [vmem:[#allocation2 + $0x110] sm:$0xff]  ;;  %v3725_v21 = vand.u32 4294901760, %v2677_v48  ;;  %2139 = vmatpush3.msra.mxu1 %v1157_v50 }
 0x157   :  { %2057 = vmatprep.subr.mxu0 %v3724_v51  ;;  %v1297_v20 = vand.u32 4294901760, %v3102_v29  ;;  %v3147_v43 = vsub.f32 %v124_v32, %v3107_v0  ;;  %v3149_v51 = vand.u32 4294901760, %v122_v22  ;;  %v1119_v41 = vand.u32 4294901760, %v1118_v24  ;;  %v120_v29 = vld [vmem:[#allocation2 + $0x108] sm:$0xff]  ;;  %2140 = vmatprep.subr.mxu1 %v1276_v6  ;;  %v135_v24 = vld [vmem:[#allocation2 + $0x180] sm:$0xff] }
 0x158   :  { %2058 = vmatpush3.msra.mxu0 %v3725_v21  ;;  %v3154_v52 = vsub.f32 %v139_v46, %v3118_v45  ;;  %v3156_v48 = vand.u32 4294901760, %v137_v15  ;;  %v1185_v32 = vand.u32 4294901760, %v3126_v16  ;;  %v3162_v50 = vsub.f32 %v123_v53, %v3131_v37  ;;  %v119_v21 = vld [vmem:[#allocation2 + $0x100] sm:$0xff]  ;;  %2141 = vmatpush3.msra.mxu1 %v1164_v1 }
 0x159   :  { %910 = vmatmul.mubr.f32.vlgmr.msra.gmra.mxu0 %v3707_v33  ;;  %2097 = vmatprep.subr.mxu0 %v2810_v8  ;;  %v3164_v33 = vand.u32 4294901760, %v121_v47  ;;  %v3727_v46 = vand.u32 4294901760, %v3092_v19  ;;  %v3172_v6 = vsub.f32 %v138_v38, %v3140_v11  ;;  %v3174_v16 = vand.u32 4294901760, %v136_v55 }
 0x15a   :  { %2098 = vmatpush3.msra.mxu0 %v2821_v25  ;;  %1120 = vmatprep.mubr.f32.mxu0 %v1119_v41  ;;  %v3728_v53 = vand.u32 4294901760, %v3105_v7  ;;  %v3182_v3 = vsub.f32 %v122_v22, %v3149_v51  ;;  %v3730_v38 = vand.u32 4294901760, %v3116_v28  ;;  %v3731_v22 = vand.u32 4294901760, %v3129_v49 }
 0x15b   :  { %3726 = vst [vmem:[#allocation13_spill] sm:$0xff] %v3164_v33  ;;  %v1303_v5 = vsub.f32 %v3092_v19, %v3727_v46  ;;  %2099 = vmatprep.subr.mxu0 %v2832_v59  ;;  %v3184_v46 = vand.u32 4294901760, %v120_v29  ;;  %2142 = vmatprep.subr.mxu1 %v1283_v27  ;;  %v3192_v19 = vsub.f32 %v137_v15, %v3156_v48  ;;  %v3732_v35 = vand.u32 4294901760, %v3138_v26 }
 0x15c   :  { %v1191_v4 = vsub.f32 %v3105_v7, %v3728_v53  ;;  %2100 = vmatpush3.msra.mxu0 %v2837_v60  ;;  %v1310_v1 = vsub.f32 %v3116_v28, %v3730_v38  ;;  %v3194_v53 = vand.u32 4294901760, %v135_v24  ;;  %2143 = vmatpush3.msra.mxu1 %v1171_v42  ;;  %v1198_v27 = vsub.f32 %v3129_v49, %v3731_v22 }
 0x15d   :  { %3729 = vst [vmem:[#allocation15_spill] sm:$0xff] %v3184_v46  ;;  %2101 = vmatprep.subr.mxu0 %v2845_v23  ;;  %v3202_v7 = vsub.f32 %v121_v47, %v3164_v33  ;;  %v3204_v38 = vand.u32 4294901760, %v119_v21  ;;  %2144 = vmatprep.subr.mxu1 %v1290_v31  ;;  %v1304_v15 = vand.u32 4294901760, %v1303_v5  ;;  %v1317_v42 = vsub.f32 %v3138_v26, %v3732_v35 }
 0x15e   :  { %2102 = vmatpush3.msra.mxu0 %v2851_v14  ;;  %v3212_v63 = vsub.f32 %v136_v55, %v3174_v16  ;;  %2145 = vmatpush3.msra.mxu1 %v1178_v36  ;;  %v1192_v47 = vand.u32 4294901760, %v1191_v4  ;;  %v3733_v22 = vand.u32 4294901760, %v3147_v43  ;;  %v3220_v5 = vsub.f32 %v120_v29, %v3184_v46 }
 0x15f   :  { %2103 = vmatprep.subr.mxu0 %v2859_v9  ;;  %2146 = vmatprep.subr.mxu1 %v1297_v20  ;;  %v1311_v35 = vand.u32 4294901760, %v1310_v1  ;;  %v3734_v55 = vand.u32 4294901760, %v3154_v52  ;;  %v3228_v4 = vsub.f32 %v135_v24, %v3194_v53  ;;  %v3735_v29 = vand.u32 4294901760, %v3162_v50 }
 0x160   :  { %v1205_v31 = vsub.f32 %v3147_v43, %v3733_v22  ;;  %2104 = vmatpush3.msra.mxu0 %v2873_v17  ;;  %2147 = vmatpush3.msra.mxu1 %v1185_v32  ;;  %v1199_v22 = vand.u32 4294901760, %v1198_v27  ;;  %v3236_v1 = vsub.f32 %v119_v21, %v3204_v38  ;;  %v3736_v24 = vand.u32 4294901760, %v3172_v6 }
 0x161   :  { %v1324_v36 = vsub.f32 %v3154_v52, %v3734_v55  ;;  %2105 = vmatprep.subr.mxu0 %v2882_v39  ;;  %v1212_v20 = vsub.f32 %v3162_v50, %v3735_v29  ;;  %2148 = vmatprep.subr.mxu1 %v1304_v15  ;;  %v1318_v55 = vand.u32 4294901760, %v1317_v42  ;;  %v3737_v29 = vand.u32 4294901760, %v3182_v3 }
 0x162   :  { %2106 = vmatpush3.msra.mxu0 %v2895_v62  ;;  %v1331_v32 = vsub.f32 %v3172_v6, %v3736_v24  ;;  %2149 = vmatpush3.msra.mxu1 %v1192_v47  ;;  %v1206_v27 = vand.u32 4294901760, %v1205_v31  ;;  %v3738_v42 = vand.u32 4294901760, %v3192_v19  ;;  %v3739_v31 = vand.u32 4294901760, %v3202_v7 }
 0x163   :  { %2107 = vmatprep.subr.mxu0 %v2904_v2  ;;  %v1219_v41 = vsub.f32 %v3182_v3, %v3737_v29  ;;  %2150 = vmatprep.subr.mxu1 %v1311_v35  ;;  %v1325_v15 = vand.u32 4294901760, %v1324_v36  ;;  %v1213_v47 = vand.u32 4294901760, %v1212_v20  ;;  %v3740_v36 = vand.u32 4294901760, %v3212_v63 }
 0x164   :  { %2108 = vmatpush3.msra.mxu0 %v2915_v34  ;;  %v1338_v24 = vsub.f32 %v3192_v19, %v3738_v42  ;;  %2151 = vmatpush3.msra.mxu1 %v1199_v22  ;;  %v1226_v29 = vsub.f32 %v3202_v7, %v3739_v31  ;;  %v1332_v35 = vand.u32 4294901760, %v1331_v32  ;;  %v3741_v20 = vand.u32 4294901760, %v3220_v5 }
 0x165   :  { %2109 = vmatprep.subr.mxu0 %v2929_v13  ;;  %2152 = vmatprep.subr.mxu1 %v1318_v55  ;;  %v1345_v42 = vsub.f32 %v3212_v63, %v3740_v36  ;;  %v1220_v22 = vand.u32 4294901760, %v1219_v41  ;;  %v3742_v55 = vand.u32 4294901760, %v3228_v4  ;;  %v3271_v21 = vand.u32 4294901760, %v2865_v10 }
 0x166   :  { %2110 = vmatpush3.msra.mxu0 %v2939_v57  ;;  %2153 = vmatpush3.msra.mxu1 %v1206_v27  ;;  %v1233_v28 = vsub.f32 %v3220_v5, %v3741_v20  ;;  %v1339_v31 = vand.u32 4294901760, %v1338_v24  ;;  %v1227_v27 = vand.u32 4294901760, %v1226_v29  ;;  %v3744_v41 = vand.u32 4294901760, %v3236_v1 }
 0x167   :  { %2111 = vmatprep.subr.mxu0 %v2953_v18  ;;  %2154 = vmatprep.subr.mxu1 %v1325_v15  ;;  %v1352_v32 = vsub.f32 %v3228_v4, %v3742_v55  ;;  %3743 = vst [vmem:[#allocation17_spill] sm:$0xff] %v3271_v21  ;;  %v1346_v15 = vand.u32 4294901760, %v1345_v42  ;;  %v3748_v55 = vld [vmem:[#allocation6_spill] sm:$0xff] }
 0x168   :  { %2112 = vmatpush3.msra.mxu0 %v2981_v61  ;;  %2155 = vmatpush3.msra.mxu1 %v1213_v47  ;;  %v1240_v36 = vsub.f32 %v3236_v1, %v3744_v41  ;;  %v1234_v24 = vand.u32 4294901760, %v1233_v28  ;;  %v3282_v47 = vsub.f32 %v2865_v10, %v3271_v21  ;;  %v3745_v10 = vand.u32 4294901760, %v3019_v40  ;;  %v3751_v41 = vld [vmem:[#allocation16_spill] sm:$0xff] }
 0x169   :  { %2113 = vmatprep.subr.mxu0 %v3045_v54  ;;  %2156 = vmatprep.subr.mxu1 %v1332_v35  ;;  %v1353_v20 = vand.u32 4294901760, %v1352_v32  ;;  %v3749_v32 = vld [vmem:[#allocation14_spill] sm:$0xff] }
 0x16a   :  { %2114 = vmatpush3.msra.mxu0 %v3057_v56  ;;  %2157 = vmatpush3.msra.mxu1 %v1220_v22  ;;  %v1241_v29 = vand.u32 4294901760, %v1240_v36  ;;  %v3599_v28 = vand.u32 4294901760, %v3282_v47  ;;  %v3746_v22 = vld [vmem:[#allocation5_spill] sm:$0xff] }
 0x16b   :  { %2115 = vmatprep.subr.mxu0 %v3069_v30  ;;  %2158 = vmatprep.subr.mxu1 %v1339_v31  ;;  %v3747_v31 = vld [vmem:[#allocation12_spill] sm:$0xff]  ;;  %v3753_v36 = vld [vmem:[#allocation9_spill] sm:$0xff] }
 0x16c   :  { %2116 = vmatpush3.msra.mxu0 %v3080_v12  ;;  %2159 = vmatpush3.msra.mxu1 %v1227_v27  ;;  %v1124_v35 = vsub.f32 %v3282_v47, %v3599_v28  ;;  %v3750_v27 = vld [vmem:[#allocation7_spill] sm:$0xff]  ;;  %v3761_v28 = vld [vmem:[#allocation25_spill] sm:$0xff] }
 0x16d   :  { %2117 = vmatprep.subr.mxu0 %v3094_v44  ;;  %2160 = vmatprep.subr.mxu1 %v1346_v15  ;;  %v3754_v15 = vld [vmem:[#allocation10_spill] sm:$0xff] }
 0x16e   :  { %2118 = vmatpush3.msra.mxu0 %v3107_v0  ;;  %2161 = vmatpush3.msra.mxu1 %v1234_v24  ;;  %v1125_v42 = vand.u32 4294901760, %v1124_v35  ;;  %v3755_v24 = vld [vmem:[#allocation11_spill] sm:$0xff]  ;;  %v3759_v35 = vld [vmem:[#allocation20_spill] sm:$0xff] }
 0x16f   :  { %2119 = vmatprep.subr.mxu0 %v3118_v45  ;;  %2162 = vmatprep.subr.mxu1 %v1353_v20  ;;  %v3756_v20 = vld [vmem:[#allocation26_spill] sm:$0xff] }
 0x170   :  { %2120 = vmatpush3.msra.mxu0 %v3131_v37  ;;  %2163 = vmatpush3.msra.mxu1 %v1241_v29  ;;  %v3757_v29 = vld [vmem:[#allocation27_spill] sm:$0xff] }
 0x171   :  { %2121 = vmatprep.subr.mxu0 %v3140_v11  ;;  %1358 = vmatmul.mubr.f32.vlgmr.msra.gmra.mxu1 %v3271_v21  ;;  %v3762_v21 = vld [vmem:[#allocation21_spill] sm:$0xff] }
 0x172   :  { %2202 = vmatprep.subr.mxu1 %v2810_v8  ;;  %2122 = vmatpush3.msra.mxu0 %v3149_v51 }
 0x173   :  { %2203 = vmatpush3.msra.mxu1 %v2821_v25  ;;  %1600 = vmatprep.mubr.f32.mxu1 %v3745_v10  ;;  %v3758_v10 = vld [vmem:[#allocation19_spill] sm:$0xff] }
 0x174   :  { %2123 = vmatprep.subr.mxu0 %v3156_v48  ;;  %2204 = vmatprep.subr.mxu1 %v2832_v59 }
 0x175   :  { %2124 = vmatpush3.msra.mxu0 %v3164_v33  ;;  %2205 = vmatpush3.msra.mxu1 %v2837_v60 }
 0x176   :  { %2125 = vmatprep.subr.mxu0 %v3174_v16  ;;  %2206 = vmatprep.subr.mxu1 %v2845_v23 }
 0x177   :  { %2126 = vmatpush3.msra.mxu0 %v3184_v46  ;;  %2207 = vmatpush3.msra.mxu1 %v2851_v14 }
 0x178   :  { %2127 = vmatprep.subr.mxu0 %v3194_v53  ;;  %2208 = vmatprep.subr.mxu1 %v2859_v9 }
 0x179   :  { %2128 = vmatpush3.msra.mxu0 %v3204_v38  ;;  %2209 = vmatpush3.msra.mxu1 %v2873_v17 }
 0x17a   :  { %1126 = vmatmul.mubr.f32.vlgmr.msra.gmra.mxu0 %v1125_v42  ;;  %2167 = vmatprep.subr.mxu0 %v2827_v58  ;;  %v3760_v42 = vld [vmem:[#allocation24_spill] sm:$0xff] }
 0x17b   :  { %2210 = vmatprep.subr.mxu1 %v2882_v39  ;;  %2168 = vmatpush3.msra.mxu0 %v3746_v22 }
 0x17c   :  { %1493 = vmatprep.mubr.f32.mxu0 %v3019_v40  ;;  %2211 = vmatpush3.msra.mxu1 %v2895_v62  ;;  %v3752_v40 = vld [vmem:[#allocation8_spill] sm:$0xff] }
 0x17d   :  { %2169 = vmatprep.subr.mxu0 %v3747_v31  ;;  %2212 = vmatprep.subr.mxu1 %v2904_v2 }
 0x17e   :  { %2170 = vmatpush3.msra.mxu0 %v3748_v55  ;;  %2213 = vmatpush3.msra.mxu1 %v2915_v34 }
 0x17f   :  { %2171 = vmatprep.subr.mxu0 %v3749_v32  ;;  %2214 = vmatprep.subr.mxu1 %v2929_v13 }
 0x180   :  { %2172 = vmatpush3.msra.mxu0 %v3750_v27  ;;  %2215 = vmatpush3.msra.mxu1 %v2939_v57 }
 0x181   :  { %2173 = vmatprep.subr.mxu0 %v3751_v41  ;;  %2216 = vmatprep.subr.mxu1 %v2953_v18 }
 0x182   :  { %2174 = vmatpush3.msra.mxu0 %v3752_v40  ;;  %2217 = vmatpush3.msra.mxu1 %v2981_v61 }
 0x183   :  { %2175 = vmatprep.subr.mxu0 %v3753_v36  ;;  %2218 = vmatprep.subr.mxu1 %v3045_v54 }
 0x184   :  { %2176 = vmatpush3.msra.mxu0 %v3754_v15  ;;  %2219 = vmatpush3.msra.mxu1 %v3057_v56 }
 0x185   :  { %2177 = vmatprep.subr.mxu0 %v3755_v24  ;;  %2220 = vmatprep.subr.mxu1 %v3069_v30 }
 0x186   :  { %2178 = vmatpush3.msra.mxu0 %v3756_v20  ;;  %2221 = vmatpush3.msra.mxu1 %v3080_v12 }
 0x187   :  { %2179 = vmatprep.subr.mxu0 %v3757_v29  ;;  %2222 = vmatprep.subr.mxu1 %v3094_v44  ;;  %v3763_v44 = vld [vmem:[#allocation22_spill] sm:$0xff] }
 0x188   :  { %2180 = vmatpush3.msra.mxu0 %v3758_v10  ;;  %2223 = vmatpush3.msra.mxu1 %v3107_v0 }
 0x189   :  { %2181 = vmatprep.subr.mxu0 %v3759_v35  ;;  %2224 = vmatprep.subr.mxu1 %v3118_v45 }
 0x18a   :  { %2182 = vmatpush3.msra.mxu0 %v3760_v42  ;;  %2225 = vmatpush3.msra.mxu1 %v3131_v37 }
 0x18b   :  { %2183 = vmatprep.subr.mxu0 %v3761_v28  ;;  %2226 = vmatprep.subr.mxu1 %v3140_v11 }
 0x18c   :  { %2184 = vmatpush3.msra.mxu0 %v3762_v21  ;;  %2227 = vmatpush3.msra.mxu1 %v3149_v51 }
 0x18d   :  { %2185 = vmatprep.subr.mxu0 %v3763_v44  ;;  %2228 = vmatprep.subr.mxu1 %v3156_v48 }
 0x18e   :  { %2186 = vmatpush3.msra.mxu0 %v3129_v49  ;;  %2229 = vmatpush3.msra.mxu1 %v3164_v33  ;;  %v3764_v33 = vand.u32 4294901760, %v3282_v47 }
 0x18f   :  { %2187 = vmatprep.subr.mxu0 %v3138_v26  ;;  %2230 = vmatprep.subr.mxu1 %v3174_v16 }
 0x190   :  { %2188 = vmatpush3.msra.mxu0 %v3147_v43  ;;  %2231 = vmatpush3.msra.mxu1 %v3184_v46  ;;  %v3765_v46 = vld [vmem:[#allocation23_spill] sm:$0xff] }
 0x191   :  { %2189 = vmatprep.subr.mxu0 %v3154_v52  ;;  %2232 = vmatprep.subr.mxu1 %v3194_v53 }
 0x192   :  { %2190 = vmatpush3.msra.mxu0 %v3162_v50  ;;  %2233 = vmatpush3.msra.mxu1 %v3204_v38 }
 0x193   :  { %2191 = vmatprep.subr.mxu0 %v3172_v6  ;;  %1604 = vmatmul.mubr.f32.vlgmr.msra.gmra.mxu1 %v3764_v33  ;;  %v3798_v33 = vand.u32 4294901760, %v3212_v63 }
 0x194   :  { %2272 = vmatprep.subr.mxu1 %v2810_v8  ;;  %2192 = vmatpush3.msra.mxu0 %v3182_v3  ;;  %v3766_v8 = vand.u32 4294901760, %v2827_v58  ;;  %v3770_v58 = vand.u32 4294901760, %v3749_v32 }
 0x195   :  { %2273 = vmatpush3.msra.mxu1 %v2821_v25  ;;  %1874 = vmatprep.mubr.f32.mxu1 %v3765_v46  ;;  %v3767_v25 = vand.u32 4294901760, %v3746_v22 }
 0x196   :  { %2193 = vmatprep.subr.mxu0 %v3192_v19  ;;  %2274 = vmatprep.subr.mxu1 %v2832_v59  ;;  %v3768_v59 = vand.u32 4294901760, %v3747_v31 }
 0x197   :  { %2194 = vmatpush3.msra.mxu0 %v3202_v7  ;;  %2275 = vmatpush3.msra.mxu1 %v2837_v60  ;;  %v3769_v60 = vand.u32 4294901760, %v3748_v55 }
 0x198   :  { %2195 = vmatprep.subr.mxu0 %v3212_v63  ;;  %2276 = vmatprep.subr.mxu1 %v2845_v23  ;;  %v3771_v23 = vand.u32 4294901760, %v3750_v27 }
 0x199   :  { %2196 = vmatpush3.msra.mxu0 %v3220_v5  ;;  %2277 = vmatpush3.msra.mxu1 %v2851_v14  ;;  %v3772_v14 = vand.u32 4294901760, %v3751_v41 }
 0x19a   :  { %2197 = vmatprep.subr.mxu0 %v3228_v4  ;;  %2278 = vmatprep.subr.mxu1 %v2859_v9  ;;  %v3773_v9 = vand.u32 4294901760, %v3752_v40 }
 0x19b   :  { %2198 = vmatpush3.msra.mxu0 %v3236_v1  ;;  %2279 = vmatpush3.msra.mxu1 %v2873_v17  ;;  %v3774_v17 = vand.u32 4294901760, %v3753_v36 }
 0x19c   :  { %1496 = vmatmul.mubr.f32.vlgmr.msra.gmra.mxu0 %v3282_v47  ;;  %2237 = vmatprep.subr.mxu0 %v3766_v8 }
 0x19d   :  { %2280 = vmatprep.subr.mxu1 %v2882_v39  ;;  %2238 = vmatpush3.msra.mxu0 %v3767_v25  ;;  %v3775_v39 = vand.u32 4294901760, %v3754_v15 }
 0x19e   :  { %1770 = vmatprep.mubr.f32.mxu0 %v3765_v46  ;;  %2281 = vmatpush3.msra.mxu1 %v2895_v62  ;;  %v3776_v62 = vand.u32 4294901760, %v3755_v24 }
 0x19f   :  { %2239 = vmatprep.subr.mxu0 %v3768_v59  ;;  %2282 = vmatprep.subr.mxu1 %v2904_v2  ;;  %v3777_v2 = vand.u32 4294901760, %v3756_v20 }
 0x1a0   :  { %2240 = vmatpush3.msra.mxu0 %v3769_v60  ;;  %2283 = vmatpush3.msra.mxu1 %v2915_v34  ;;  %v3779_v34 = vld [vmem:[#allocation18_spill] sm:$0xff] }
 0x1a1   :  { %2241 = vmatprep.subr.mxu0 %v3770_v58  ;;  %2284 = vmatprep.subr.mxu1 %v2929_v13  ;;  %v3781_v13 = vand.u32 4294901760, %v3759_v35 }
 0x1a2   :  { %2242 = vmatpush3.msra.mxu0 %v3771_v23  ;;  %2285 = vmatpush3.msra.mxu1 %v2939_v57  ;;  %v3782_v57 = vand.u32 4294901760, %v3760_v42 }
 0x1a3   :  { %2243 = vmatprep.subr.mxu0 %v3772_v14  ;;  %2286 = vmatprep.subr.mxu1 %v2953_v18  ;;  %v3783_v18 = vand.u32 4294901760, %v3761_v28 }
 0x1a4   :  { %2244 = vmatpush3.msra.mxu0 %v3773_v9  ;;  %2287 = vmatpush3.msra.mxu1 %v2981_v61  ;;  %v3778_v61 = vand.u32 4294901760, %v3757_v29 }
 0x1a5   :  { %2245 = vmatprep.subr.mxu0 %v3774_v17  ;;  %2288 = vmatprep.subr.mxu1 %v3045_v54  ;;  %v3780_v54 = vand.u32 4294901760, %v3758_v10 }
 0x1a6   :  { %2246 = vmatpush3.msra.mxu0 %v3775_v39  ;;  %2289 = vmatpush3.msra.mxu1 %v3057_v56  ;;  %v3784_v56 = vand.u32 4294901760, %v3762_v21 }
 0x1a7   :  { %2247 = vmatprep.subr.mxu0 %v3776_v62  ;;  %2290 = vmatprep.subr.mxu1 %v3069_v30  ;;  %v3787_v30 = vld [vmem:[#allocation13_spill] sm:$0xff] }
 0x1a8   :  { %2248 = vmatpush3.msra.mxu0 %v3777_v2  ;;  %2291 = vmatpush3.msra.mxu1 %v3080_v12  ;;  %v3786_v12 = vand.u32 4294901760, %v3129_v49  ;;  %v3792_v49 = vand.u32 4294901760, %v3162_v50  ;;  %v3799_v50 = vand.u32 4294901760, %v3220_v5 }
 0x1a9   :  { %2249 = vmatprep.subr.mxu0 %v3778_v61  ;;  %2292 = vmatprep.subr.mxu1 %v3779_v34 }
 0x1aa   :  { %2250 = vmatpush3.msra.mxu0 %v3780_v54  ;;  %2293 = vmatpush3.msra.mxu1 %v3107_v0  ;;  %v3785_v0 = vand.u32 4294901760, %v3763_v44  ;;  %v3791_v44 = vand.u32 4294901760, %v3154_v52  ;;  %v3797_v52 = vand.u32 4294901760, %v3202_v7 }
 0x1ab   :  { %2251 = vmatprep.subr.mxu0 %v3781_v13  ;;  %2294 = vmatprep.subr.mxu1 %v3118_v45  ;;  %v3788_v45 = vand.u32 4294901760, %v3138_v26  ;;  %v3793_v26 = vand.u32 4294901760, %v3172_v6  ;;  %v3800_v6 = vand.u32 4294901760, %v3228_v4 }
 0x1ac   :  { %2252 = vmatpush3.msra.mxu0 %v3782_v57  ;;  %2295 = vmatpush3.msra.mxu1 %v3131_v37  ;;  %v3789_v37 = vand.u32 4294901760, %v3147_v43  ;;  %v3795_v43 = vand.u32 4294901760, %v3182_v3 }
 0x1ad   :  { %2253 = vmatprep.subr.mxu0 %v3783_v18  ;;  %2296 = vmatprep.subr.mxu1 %v3140_v11  ;;  %v3790_v11 = vld [vmem:[#allocation15_spill] sm:$0xff] }
 0x1ae   :  { %2254 = vmatpush3.msra.mxu0 %v3784_v56  ;;  %2297 = vmatpush3.msra.mxu1 %v3149_v51  ;;  %v3794_v51 = vld [vmem:[#allocation17_spill] sm:$0xff] }
 0x1af   :  { %2255 = vmatprep.subr.mxu0 %v3785_v0  ;;  %2298 = vmatprep.subr.mxu1 %v3156_v48  ;;  %v3796_v48 = vand.u32 4294901760, %v3192_v19 }
 0x1b0   :  { %2256 = vmatpush3.msra.mxu0 %v3786_v12  ;;  %2299 = vmatpush3.msra.mxu1 %v3787_v30 }
 0x1b1   :  { %2257 = vmatprep.subr.mxu0 %v3788_v45  ;;  %2300 = vmatprep.subr.mxu1 %v3174_v16  ;;  %v3801_v16 = vand.u32 4294901760, %v3236_v1 }
 0x1b2   :  { %2258 = vmatpush3.msra.mxu0 %v3789_v37  ;;  %2301 = vmatpush3.msra.mxu1 %v3790_v11 }
 0x1b3   :  { %2259 = vmatprep.subr.mxu0 %v3791_v44  ;;  %2302 = vmatprep.subr.mxu1 %v3194_v53 }
 0x1b4   :  { %2260 = vmatpush3.msra.mxu0 %v3792_v49  ;;  %2303 = vmatpush3.msra.mxu1 %v3204_v38 }
 0x1b5   :  { %2261 = vmatprep.subr.mxu0 %v3793_v26  ;;  %1876 = vmatmul.mubr.f32.vlgmr.msra.gmra.mxu1 %v3794_v51 }
 0x1b6   :  { %2262 = vmatpush3.msra.mxu0 %v3795_v43 }
 0x1b7   :  { %2263 = vmatprep.subr.mxu0 %v3796_v48 }
 0x1b8   :  { %2264 = vmatpush3.msra.mxu0 %v3797_v52 }
 0x1b9   :  { %2265 = vmatprep.subr.mxu0 %v3798_v33 }
 0x1ba   :  { %2266 = vmatpush3.msra.mxu0 %v3799_v50 }
 0x1bb   :  { %2267 = vmatprep.subr.mxu0 %v3800_v6 }
 0x1bc   :  { %2268 = vmatpush3.msra.mxu0 %v3801_v16 }
 0x1bd   :  { %1772 = vmatmul.mubr.f32.vlgmr.msra.gmra.mxu0 %v3794_v51 }
 0x1cb   :  { %v1954_v19 = vpop.f32.mrf.mxu1 }
 0x1cd   :  { %v1955_v7 = vpop.f32.mrf.mxu1 }
 0x1ce   :  { %v1956_v28 = vadd.f32 %v1955_v7, %v1954_v19 }
 0x1d3   :  { %v1919_v3 = vpop.f32.mrf.mxu0 }
 0x1d5   :  { %v1920_v46 = vpop.f32.mrf.mxu0 }
 0x1d6   :  { %v1921_v63 = vadd.f32 %v1920_v46, %v1919_v3 }
 0x1d8   :  { %v498_v31 = vadd.f32 %v1956_v28, %v1921_v63 }
 0x1ec   :  { %v2024_v38 = vpop.f32.mrf.mxu1 }
 0x1ee   :  { %v2025_v22 = vpop.f32.mrf.mxu1 }
 0x1ef   :  { %v2026_v27 = vadd.f32 %v2025_v22, %v2024_v38 }
 0x1f4   :  { %v1989_v53 = vpop.f32.mrf.mxu0 }
 0x1f6   :  { %v1990_v21 = vpop.f32.mrf.mxu0 }
 0x1f7   :  { %v1991_v5 = vadd.f32 %v1990_v21, %v1989_v53 }
 0x1f9   :  { %v636_v32 = vadd.f32 %v1991_v5, %v498_v31 }
 0x1fb   :  { %v744_v36 = vadd.f32 %v2026_v27, %v636_v32 }
 0x20e   :  { %v2094_v4 = vpop.f32.mrf.mxu1 }
 0x210   :  { %v2095_v40 = vpop.f32.mrf.mxu1 }
 0x211   :  { %v2096_v10 = vadd.f32 %v2095_v40, %v2094_v4 }
 0x219   :  { %v2059_v47 = vpop.f32.mrf.mxu0 }
 0x21b   :  { %v2060_v55 = vpop.f32.mrf.mxu0 }
 0x21c   :  { %v2061_v41 = vadd.f32 %v2060_v55, %v2059_v47 }
 0x21e   :  { %v912_v20 = vadd.f32 %v2061_v41, %v744_v36 }
 0x220   :  { %v1016_v8 = vadd.f32 %v2096_v10, %v912_v20 }
 0x231   :  { %v2164_v15 = vpop.f32.mrf.mxu1 }
 0x233   :  { %v2165_v42 = vpop.f32.mrf.mxu1 }
 0x234   :  { %v2166_v58 = vadd.f32 %v2165_v42, %v2164_v15 }
 0x23a   :  { %v2129_v1 = vpop.f32.mrf.mxu0 }
 0x23c   :  { %v2130_v24 = vpop.f32.mrf.mxu0 }
 0x23d   :  { %v2131_v35 = vadd.f32 %v2130_v24, %v2129_v1 }
 0x23f   :  { %v1128_v60 = vadd.f32 %v2131_v35, %v1016_v8 }
 0x241   :  { %v1360_v9 = vadd.f32 %v2166_v58, %v1128_v60 }
 0x253   :  { %v2234_v25 = vpop.f32.mrf.mxu1 }
 0x255   :  { %v2235_v14 = vpop.f32.mrf.mxu1 }
 0x256   :  { %v2236_v2 = vadd.f32 %v2235_v14, %v2234_v25 }
 0x25c   :  { %v2199_v29 = vpop.f32.mrf.mxu0 }
 0x25e   :  { %v2200_v59 = vpop.f32.mrf.mxu0 }
 0x25f   :  { %v2201_v23 = vadd.f32 %v2200_v59, %v2199_v29 }
 0x261   :  { %v1498_v39 = vadd.f32 %v2201_v23, %v1360_v9 }
 0x263   :  { %v1606_v54 = vadd.f32 %v2236_v2, %v1498_v39 }
 0x275   :  { %v2304_v17 = vpop.f32.mrf.mxu1 }
 0x277   :  { %v2305_v61 = vpop.f32.mrf.mxu1 }
 0x278   :  { %v2306_v57 = vadd.f32 %v2305_v61, %v2304_v17 }
 0x27d   :  { %v2269_v62 = vpop.f32.mrf.mxu0 }
 0x27f   :  { %v2270_v34 = vpop.f32.mrf.mxu0 }
 0x280   :  { %v2271_v13 = vadd.f32 %v2270_v34, %v2269_v62 }
 0x282   :  { %v1774_v18 = vadd.f32 %v2271_v13, %v1606_v54 }
 0x284   :  { %v1878_v56 = vadd.f32 %v2306_v57, %v1774_v18 }
 0x286   :  { %1881 = vst [vmem:[%s3476_s2] sm:$0xf] %v1878_v56 }
 0x287   :  { %1886 = vsyncpa [#allocation3], 1 }

</bundles_post_ra>
